<compile_context>
chip_gen: v6e
topology: v6e:2x2x1
jax: 0.10.0
libtpu: 0.0.40
codegen_flags: <defaults>
</compile_context>

<pallas_src>
import math
import jax
import jax.numpy as jnp
from jax.experimental import pallas as pl
from jax.experimental.pallas import tpu as pltpu

NUM_HEADS = 16           # MILPooling -> CrossAttention(num_heads=16)
KSIZE = 19               # mexican-hat wavelet kernel width
PAD = (KSIZE - 1) // 2   # 'same' padding for the depthwise conv
LN_EPS = 1e-5            # torch.nn.LayerNorm default eps
PVEC_ROWS = 10           # packed small-parameter rows
LANES = 128
MIN_ROWS_PER_STEP = 256  # token rows needed to amortize ~0.35us/grid-step
VMEM_BUDGET = 24 * 1024 * 1024   # keep below v7x 32 MiB scoped default
VMEM_LIMIT = 32 * 1024 * 1024


def _layernorm(x, g, b, eps=LN_EPS):
    mu = jnp.mean(x, axis=-1, keepdims=True)
    xc = x - mu
    var = jnp.mean(xc * xc, axis=-1, keepdims=True)
    return xc * jax.lax.rsqrt(var + eps) * g + b


def mil_kernel(x_ref, wfe_ref, wker_ref, wsq_ref, wkv_ref, qmask_ref, sel_ref,
               pvec_ref, logits_ref, attn_ref, xpad_ref):
    f32 = jnp.float32
    bf16 = jnp.bfloat16
    Bt, S, Cin = x_ref.shape
    D = wfe_ref.shape[1]
    HN = qmask_ref.shape[1]
    N = sel_ref.shape[0]
    S_pad = attn_ref.shape[2]
    hd = D // NUM_HEADS
    scale = 1.0 / math.sqrt(hd)          # sdpa default scale (qk_scale=None)
    bias = -math.log(S)                  # attn_bias = -log(S), applied post-scale

    # Packed tiny (1, D) parameters: one pipelined input instead of ten.
    b_fe = pvec_ref[0:1, :]
    b_p1 = pvec_ref[1:2, :]
    ln1_g = pvec_ref[2:3, :]
    ln1_b = pvec_ref[3:4, :]
    b_pr = pvec_ref[4:5, :]
    ln2_g = pvec_ref[5:6, :]
    ln2_b = pvec_ref[6:7, :]
    b_c1 = pvec_ref[7:8, :]
    w_c2 = pvec_ref[8:9, :]
    b_c2 = pvec_ref[9:10, 0:1]           # (1, 1) scalar bias of final Linear(D,1)

    # ---- Fused stand-in feature extractor: Cin -> D pointwise projection ----
    # TODO(synk): InceptionTimeFeatureExtractor is not defined in the source
    # module; stand-in pointwise projection (Cin broadcast MACs on the VPU).
    x3 = x_ref[...]                                            # (Bt, S, Cin) f32
    feat3 = jnp.broadcast_to(b_fe, (Bt, S, D)).astype(f32)
    for c in range(Cin):
        feat3 = feat3 + x3[:, :, c:c + 1] * wfe_ref[c:c + 1, :]

    # ---- WaveletEncoding: single summed 19-tap depthwise 'same' conv --------
    # (conv is linear in the kernel, so the three torch convs collapse into one
    #  conv with the summed tap table; zero 'same' padding via VMEM scratch.)
    zpad = jnp.zeros((Bt, PAD, D), f32)
    xpad_ref[:, 0:PAD, :] = zpad
    xpad_ref[:, PAD + S:PAD + S + PAD, :] = zpad
    xpad_ref[:, PAD:PAD + S, :] = feat3
    pos = xpad_ref[:, 0:S, :] * wker_ref[0:1, :]
    for t in range(1, KSIZE):
        pos = pos + xpad_ref[:, t:t + S, :] * wker_ref[t:t + 1, :]

    feat2 = feat3.reshape(Bt * S, D)
    pos2 = pos.reshape(Bt * S, D)
    x_enc = feat2 + jnp.dot(pos2.astype(bf16), wsq_ref[0],
                            preferred_element_type=f32) + b_p1

    # ---- MILPooling: LayerNorm(tokens) + sigmoid cross-attention ------------
    y = _layernorm(x_enc, ln1_g, ln1_b)
    yb = y.astype(bf16)
    k = jnp.dot(yb, wkv_ref[0], preferred_element_type=f32)    # (Bt*S, D)
    v = jnp.dot(yb, wkv_ref[1], preferred_element_type=f32)    # (Bt*S, D)
    kb16 = k.astype(bf16)
    vb16 = v.astype(bf16)

    qm = qmask_ref[0]                      # (HN, D) bf16, pre-masked per head
    blkmask = qmask_ref[1].astype(f32)     # (HN, D) 0/1 block-diag head mask
    sel = sel_ref[...]                     # (N, HN) bf16 head-concat selector
    lane_pad = S_pad - S

    for bb in range(Bt):
        k_b = kb16[bb * S:(bb + 1) * S, :]                     # (S, D)
        v_b = vb16[bb * S:(bb + 1) * S, :]                     # (S, D)
        scores = jax.lax.dot_general(qm, k_b, (((1,), (1,)), ((), ())),
                                     preferred_element_type=f32)   # (HN, S)
        a_b = jax.nn.sigmoid(scores * scale + bias)
        if lane_pad > 0:   # lane-dense attention store; wrapper slices [:, :, :S]
            attn_ref[bb] = jnp.concatenate(
                [a_b, jnp.zeros((HN, lane_pad), f32)], axis=1)
        else:
            attn_ref[bb] = a_b

        full = jnp.dot(a_b.astype(bf16), v_b,
                       preferred_element_type=f32) * blkmask   # (HN, D)
        out = jnp.dot(sel, full.astype(bf16),
                      preferred_element_type=f32)              # (N, D) heads concat
        cls_out = jnp.dot(out.astype(bf16), wsq_ref[1],
                          preferred_element_type=f32) + b_pr

        # ---- final LayerNorm + classifier head (Linear-ReLU-Linear(1)) ------
        y2 = _layernorm(cls_out, ln2_g, ln2_b)
        h1 = jnp.maximum(jnp.dot(y2.astype(bf16), wsq_ref[2],
                                 preferred_element_type=f32) + b_c1, 0.0)
        logit = jnp.sum(h1 * w_c2, axis=-1, keepdims=True) + b_c2   # (N, 1)
        # lane-dense store: broadcast across 128 lanes; wrapper slices lane 0.
        logits_ref[bb] = jnp.broadcast_to(logit, (N, LANES))


# ---------------------------- JAX glue ---------------------------------------
def mexican_hat_wavelet(scale, shift, ksize=KSIZE):
    """scale, shift: (D,) -> (D, ksize) mexican-hat kernels (matches the torch fn)."""
    xs = jnp.arange(ksize, dtype=jnp.float32) - (ksize - 1) // 2        # -9 .. 9
    x = xs[None, :] - shift[:, None]
    C = 2.0 / (math.sqrt(3.0) * math.pi ** 0.25)
    r = x / scale[:, None]
    return C * (1.0 - r * r) * jnp.exp(-(r * r) / 2.0) / jnp.sqrt(jnp.abs(scale[:, None]))


def init_params(key, in_features, mDim=64, n_classes=2):
    ks = jax.random.split(key, 16)

    def lin(k, fan_in, fan_out):  # xavier-uniform, stored (in, out) so x @ W == torch Linear
        bound = math.sqrt(6.0 / (fan_in + fan_out))
        return jax.random.uniform(k, (fan_in, fan_out), jnp.float32, -bound, bound)

    D = mDim
    return {
        "w_fe": lin(ks[0], in_features, D),
        "b_fe": jnp.zeros((1, D), jnp.float32),
        # wave params: row0 = scale, row1 = shift (scales kept away from 0)
        "wave1": jnp.stack([1.0 + 0.3 * jax.random.normal(ks[1], (D,)),
                            0.3 * jax.random.normal(ks[2], (D,))]),
        "wave2": jnp.stack([1.0 + 0.3 * jax.random.normal(ks[3], (D,)),
                            jnp.zeros((D,))]),
        "wave3": jnp.stack([1.0 + 0.3 * jax.random.normal(ks[4], (D,)),
                            jnp.zeros((D,))]),
        "w_p1": lin(ks[5], D, D),
        "b_p1": jnp.zeros((1, D), jnp.float32),
        "ln1_g": jnp.ones((1, D), jnp.float32),
        "ln1_b": jnp.zeros((1, D), jnp.float32),
        "cls": 0.02 * jax.random.normal(ks[6], (n_classes, D), jnp.float32),
        "w_q": lin(ks[7], D, D),          # bias=False
        "w_kv": lin(ks[8], D, 2 * D),     # bias=False
        "w_pr": lin(ks[9], D, D),
        "b_pr": jnp.zeros((1, D), jnp.float32),
        "ln2_g": jnp.ones((1, D), jnp.float32),
        "ln2_b": jnp.zeros((1, D), jnp.float32),
        "w_c1": lin(ks[10], D, D),
        "b_c1": jnp.zeros((1, D), jnp.float32),
        "w_c2": lin(ks[11], D, 1).T,      # stored (1, D)
        "b_c2": jnp.zeros((1, 1), jnp.float32),
    }


def _vmem_estimate_bytes(block_b, S, Cin, D, HN, N, S_pad):
    f32, bf16 = 4, 2
    weights = (Cin * D + KSIZE * D + PVEC_ROWS * D) * f32 \
        + (5 * D * D + 2 * HN * D + N * HN) * bf16
    per_block_io = block_b * S * Cin * f32 \
        + block_b * (N * LANES + HN * S_pad) * f32
    scratch = block_b * (S + 2 * PAD) * D * f32
    activations = block_b * S * D * f32 * 8      # feat/pos/x_enc/y/k/v + headroom
    return 2 * (weights + per_block_io) + scratch + activations


def mil_forward(x, p, block_b=None):
    B, S, Cin = x.shape
    D = p["w_p1"].shape[0]
    N = p["cls"].shape[0]
    H = NUM_HEADS
    assert D % H == 0
    hd = D // H
    HN = H * N
    S_pad = S if S % LANES == 0 else (S // LANES + 1) * LANES

    # --- grid / block selection ---------------------------------------------
    if block_b is None:
        # Default: one grid step (overhead-bound at small sizes on all gens).
        block_b = B
        if B >= 2 and B * S >= 2 * MIN_ROWS_PER_STEP:
            # Enough work: split so each step still has >= MIN_ROWS_PER_STEP
            # token rows (also lets both v7x TensorCores contribute).
            for cand in range(B // 2, 0, -1):
                if B % cand == 0 and cand * S >= MIN_ROWS_PER_STEP:
                    block_b = cand
                    break
    # VMEM guardrail (v7x: 64 MiB physical / 32 MiB scoped default).
    # TODO(synk): for very large MIL bag sizes also tile the S axis.
    while block_b > 1 and _vmem_estimate_bytes(block_b, S, Cin, D, HN, N,
                                               S_pad) > VMEM_BUDGET:
        block_b -= 1
        while B % block_b:
            block_b -= 1
    assert B % block_b == 0, f"block_b={block_b} must divide B={B}"
    grid = B // block_b

    # --- host-side, batch-invariant setup (cheap XLA glue) -------------------
    # Conv is linear in the kernel, so the three depthwise wavelet convs fold
    # into one conv with the summed (19, D) tap table.
    k1 = mexican_hat_wavelet(p["wave1"][0], p["wave1"][1])
    k2 = mexican_hat_wavelet(p["wave2"][0], p["wave2"][1])
    k3 = mexican_hat_wavelet(p["wave3"][0], p["wave3"][1])
    wker = (k1 + k2 + k3).T                                    # (KSIZE, D)

    # Batch-invariant attention setup: q = cls @ Wq, replicated per head
    # (rows h*N+n) with a block-diagonal head mask (head_dim=4 is too small
    # for per-head MXU dots), plus the head-concat selector.  Computed once.
    q = jnp.dot(p["cls"], p["w_q"])                            # (N, D)
    q_rep = jnp.broadcast_to(q[None], (H, N, D)).reshape(HN, D)
    row_h = jnp.repeat(jnp.arange(H), N)                       # head of row
    col_h = jnp.arange(D) // hd                                # head of column
    blkmask = (row_h[:, None] == col_h[None, :]).astype(jnp.float32)   # (HN, D)
    qm = q_rep * blkmask
    qmask = jnp.stack([qm, blkmask]).astype(jnp.bfloat16)      # (2, HN, D)
    sel = (jnp.arange(HN)[None, :] % N ==
           jnp.arange(N)[:, None]).astype(jnp.bfloat16)        # (N, HN)

    # Pack the tiny (1, D) parameters into a single pipelined input.
    pvec = jnp.concatenate([
        p["b_fe"], p["b_p1"], p["ln1_g"], p["ln1_b"], p["b_pr"],
        p["ln2_g"], p["ln2_b"], p["b_c1"], p["w_c2"],
        jnp.broadcast_to(p["b_c2"], (1, D)),
    ], axis=0)                                                 # (PVEC_ROWS, D)

    # bf16 MXU operands (f32 accumulation); VPU-side math stays f32.
    wsq = jnp.stack([p["w_p1"], p["w_pr"], p["w_c1"]]).astype(jnp.bfloat16)
    wkv = jnp.stack([p["w_kv"][:, :D], p["w_kv"][:, D:]]).astype(jnp.bfloat16)
    wfe = p["w_fe"].astype(jnp.float32)                        # (Cin, D), VPU MACs

    def full2d(shp):
        return pl.BlockSpec(shp, lambda b: (0, 0))

    def full3d(shp):
        return pl.BlockSpec(shp, lambda b: (0, 0, 0))

    in_specs = [
        pl.BlockSpec((block_b, S, Cin), lambda b: (b, 0, 0)),  # raw input x
        full2d((Cin, D)),                                      # wfe (stand-in FE)
        full2d((KSIZE, D)),                                    # summed wavelet taps
        full3d((3, D, D)),                                     # wp1 / wpr / wc1 (bf16)
        full3d((2, D, D)),                                     # wk / wv (bf16)
        full3d((2, HN, D)),                                    # qm + block-diag mask
        full2d((N, HN)),                                       # head-concat selector
        full2d((PVEC_ROWS, D)),                                # packed small params
    ]
    out_specs = (
        pl.BlockSpec((block_b, N, LANES), lambda b: (b, 0, 0)),
        pl.BlockSpec((block_b, HN, S_pad), lambda b: (b, 0, 0)),
    )
    out_shape = (
        jax.ShapeDtypeStruct((B, N, LANES), jnp.float32),
        jax.ShapeDtypeStruct((B, HN, S_pad), jnp.float32),
    )

    # Advisory cost estimate so XLA schedules host glue around the call.
    flops = int(
        2 * B * S * D * (Cin + KSIZE + D + 2 * D)      # feat proj, wavelet, p1, kv
        + 2 * B * HN * S * D * 2                       # scores + attn@v
        + 2 * B * N * (HN * D + 2 * D * D + D))        # concat-select, proj, clf
    transcendentals = int(B * (HN * S + S + N))        # sigmoid + layernorm rsqrt
    bytes_accessed = int(
        B * S * Cin * 4
        + (Cin * D + KSIZE * D + PVEC_ROWS * D) * 4
        + (5 * D * D + 2 * HN * D + N * HN) * 2
        + B * N * LANES * 4 + B * HN * S_pad * 4)

    logits_pad, attn_flat = pl.pallas_call(
        mil_kernel,
        out_shape=out_shape,
        grid_spec=pltpu.PrefetchScalarGridSpec(
            num_scalar_prefetch=0,
            grid=(grid,),
            in_specs=in_specs,
            out_specs=out_specs,
            scratch_shapes=[
                pltpu.VMEM((block_b, S + 2 * PAD, D), jnp.float32)],
        ),
        compiler_params=pltpu.CompilerParams(
            dimension_semantics=("parallel",),
            vmem_limit_bytes=VMEM_LIMIT),
        cost_estimate=pl.CostEstimate(
            flops=flops, transcendentals=transcendentals,
            bytes_accessed=bytes_accessed),
    )(x, wfe, wker, wsq, wkv, qmask, sel, pvec)

    logits = logits_pad[:, :, 0]                       # (B, n_classes)
    attn = attn_flat[:, :, :S].reshape(B, H, N, S)     # (B, heads, n_classes, seq)
    return logits, attn


if __name__ == "__main__":
    key = jax.random.PRNGKey(0)
    kx, kp = jax.random.split(key)
    B, S, Cin = 2, 16, 4          # batch=2, seq=16, in_features=4, mDim=64, n_classes=2
    x = jax.random.normal(kx, (B, S, Cin), jnp.float32)
    params = init_params(kp, in_features=Cin, mDim=64, n_classes=2)

    logits, attn = jax.jit(mil_forward)(x, params)
    jax.block_until_ready((logits, attn))
    assert logits.shape == (B, 2) and attn.shape == (B, NUM_HEADS, 2, S)
    assert bool(jnp.all(jnp.isfinite(logits))) and bool(jnp.all(jnp.isfinite(attn)))
    print("KERNEL_OK")
</pallas_src>

<mosaic_0001>
module attributes {stable_mosaic.version = 11 : i64} {
  func.func @mil_kernel(%arg0: i32, %arg1: memref<2x16x4xf32, #tpu.memory_space<vmem>>, %arg2: memref<4x64xf32, #tpu.memory_space<vmem>>, %arg3: memref<19x64xf32, #tpu.memory_space<vmem>>, %arg4: memref<3x64x64xbf16, #tpu.memory_space<vmem>>, %arg5: memref<2x64x64xbf16, #tpu.memory_space<vmem>>, %arg6: memref<2x32x64xbf16, #tpu.memory_space<vmem>>, %arg7: memref<2x32xbf16, #tpu.memory_space<vmem>>, %arg8: memref<10x64xf32, #tpu.memory_space<vmem>>, %arg9: memref<2x2x128xf32, #tpu.memory_space<vmem>>, %arg10: memref<2x32x128xf32, #tpu.memory_space<vmem>>, %arg11: memref<2x34x64xf32, #tpu.memory_space<vmem>>) attributes {dimension_semantics = [#tpu.dimension_semantics<parallel>], iteration_bounds = array<i64: 1>, scalar_prefetch = 0 : i64, scratch_operands = 1 : i64, tpu.core_type = #tpu.core_type<tc>, window_params = [{transform_indices = @transform_0, window_bounds = array<i64: 2, 16, 4>}, {pipeline_mode = #tpu.pipeline_mode<synchronous>, transform_indices = @transform_1, window_bounds = array<i64: 4, 64>}, {pipeline_mode = #tpu.pipeline_mode<synchronous>, transform_indices = @transform_2, window_bounds = array<i64: 19, 64>}, {pipeline_mode = #tpu.pipeline_mode<synchronous>, transform_indices = @transform_3, window_bounds = array<i64: 3, 64, 64>}, {pipeline_mode = #tpu.pipeline_mode<synchronous>, transform_indices = @transform_4, window_bounds = array<i64: 2, 64, 64>}, {pipeline_mode = #tpu.pipeline_mode<synchronous>, transform_indices = @transform_5, window_bounds = array<i64: 2, 32, 64>}, {pipeline_mode = #tpu.pipeline_mode<synchronous>, transform_indices = @transform_6, window_bounds = array<i64: 2, 32>}, {pipeline_mode = #tpu.pipeline_mode<synchronous>, transform_indices = @transform_7, window_bounds = array<i64: 10, 64>}, {transform_indices = @transform_8, window_bounds = array<i64: 2, 2, 128>}, {transform_indices = @transform_9, window_bounds = array<i64: 2, 32, 128>}]} {
    %c0 = arith.constant 0 : index
    %c0_0 = arith.constant 0 : index
    %0 = vector.load %arg8[%c0, %c0_0] : memref<10x64xf32, #tpu.memory_space<vmem>>, vector<1x64xf32>
    %c1 = arith.constant 1 : index
    %c0_1 = arith.constant 0 : index
    %1 = vector.load %arg8[%c1, %c0_1] : memref<10x64xf32, #tpu.memory_space<vmem>>, vector<1x64xf32>
    %c2 = arith.constant 2 : index
    %c0_2 = arith.constant 0 : index
    %2 = vector.load %arg8[%c2, %c0_2] : memref<10x64xf32, #tpu.memory_space<vmem>>, vector<1x64xf32>
    %c3 = arith.constant 3 : index
    %c0_3 = arith.constant 0 : index
    %3 = vector.load %arg8[%c3, %c0_3] : memref<10x64xf32, #tpu.memory_space<vmem>>, vector<1x64xf32>
    %c4 = arith.constant 4 : index
    %c0_4 = arith.constant 0 : index
    %4 = vector.load %arg8[%c4, %c0_4] : memref<10x64xf32, #tpu.memory_space<vmem>>, vector<1x64xf32>
    %c5 = arith.constant 5 : index
    %c0_5 = arith.constant 0 : index
    %5 = vector.load %arg8[%c5, %c0_5] : memref<10x64xf32, #tpu.memory_space<vmem>>, vector<1x64xf32>
    %c6 = arith.constant 6 : index
    %c0_6 = arith.constant 0 : index
    %6 = vector.load %arg8[%c6, %c0_6] : memref<10x64xf32, #tpu.memory_space<vmem>>, vector<1x64xf32>
    %c7 = arith.constant 7 : index
    %c0_7 = arith.constant 0 : index
    %7 = vector.load %arg8[%c7, %c0_7] : memref<10x64xf32, #tpu.memory_space<vmem>>, vector<1x64xf32>
    %c8 = arith.constant 8 : index
    %c0_8 = arith.constant 0 : index
    %8 = vector.load %arg8[%c8, %c0_8] : memref<10x64xf32, #tpu.memory_space<vmem>>, vector<1x64xf32>
    %c9 = arith.constant 9 : index
    %c0_9 = arith.constant 0 : index
    %9 = vector.load %arg8[%c9, %c0_9] : memref<10x64xf32, #tpu.memory_space<vmem>>, vector<1x1xf32>
    %c0_10 = arith.constant 0 : index
    %c0_11 = arith.constant 0 : index
    %c0_12 = arith.constant 0 : index
    %10 = vector.load %arg1[%c0_10, %c0_11, %c0_12] : memref<2x16x4xf32, #tpu.memory_space<vmem>>, vector<2x16x4xf32>
    %11 = vector.shape_cast %0 : vector<1x64xf32> to vector<1x1x64xf32>
    %12 = vector.broadcast %11 : vector<1x1x64xf32> to vector<2x16x64xf32>
    %13 = vector.extract_strided_slice %10 {offsets = [0, 0, 0], sizes = [2, 16, 1], strides = [1, 1, 1]} : vector<2x16x4xf32> to vector<2x16x1xf32>
    %c0_13 = arith.constant 0 : index
    %c0_14 = arith.constant 0 : index
    %14 = vector.load %arg2[%c0_13, %c0_14] : memref<4x64xf32, #tpu.memory_space<vmem>>, vector<1x64xf32>
    %15 = vector.shape_cast %14 : vector<1x64xf32> to vector<1x1x64xf32>
    %16 = vector.broadcast %13 : vector<2x16x1xf32> to vector<2x16x64xf32>
    %17 = vector.broadcast %15 : vector<1x1x64xf32> to vector<2x16x64xf32>
    %18 = arith.mulf %16, %17 : vector<2x16x64xf32>
    %19 = arith.addf %12, %18 : vector<2x16x64xf32>
    %20 = vector.extract_strided_slice %10 {offsets = [0, 0, 1], sizes = [2, 16, 1], strides = [1, 1, 1]} : vector<2x16x4xf32> to vector<2x16x1xf32>
    %c1_15 = arith.constant 1 : index
    %c0_16 = arith.constant 0 : index
    %21 = vector.load %arg2[%c1_15, %c0_16] : memref<4x64xf32, #tpu.memory_space<vmem>>, vector<1x64xf32>
    %22 = vector.shape_cast %21 : vector<1x64xf32> to vector<1x1x64xf32>
    %23 = vector.broadcast %20 : vector<2x16x1xf32> to vector<2x16x64xf32>
    %24 = vector.broadcast %22 : vector<1x1x64xf32> to vector<2x16x64xf32>
    %25 = arith.mulf %23, %24 : vector<2x16x64xf32>
    %26 = arith.addf %19, %25 : vector<2x16x64xf32>
    %27 = vector.extract_strided_slice %10 {offsets = [0, 0, 2], sizes = [2, 16, 1], strides = [1, 1, 1]} : vector<2x16x4xf32> to vector<2x16x1xf32>
    %c2_17 = arith.constant 2 : index
    %c0_18 = arith.constant 0 : index
    %28 = vector.load %arg2[%c2_17, %c0_18] : memref<4x64xf32, #tpu.memory_space<vmem>>, vector<1x64xf32>
    %29 = vector.shape_cast %28 : vector<1x64xf32> to vector<1x1x64xf32>
    %30 = vector.broadcast %27 : vector<2x16x1xf32> to vector<2x16x64xf32>
    %31 = vector.broadcast %29 : vector<1x1x64xf32> to vector<2x16x64xf32>
    %32 = arith.mulf %30, %31 : vector<2x16x64xf32>
    %33 = arith.addf %26, %32 : vector<2x16x64xf32>
    %34 = vector.extract_strided_slice %10 {offsets = [0, 0, 3], sizes = [2, 16, 1], strides = [1, 1, 1]} : vector<2x16x4xf32> to vector<2x16x1xf32>
    %c3_19 = arith.constant 3 : index
    %c0_20 = arith.constant 0 : index
    %35 = vector.load %arg2[%c3_19, %c0_20] : memref<4x64xf32, #tpu.memory_space<vmem>>, vector<1x64xf32>
    %36 = vector.shape_cast %35 : vector<1x64xf32> to vector<1x1x64xf32>
    %37 = vector.broadcast %34 : vector<2x16x1xf32> to vector<2x16x64xf32>
    %38 = vector.broadcast %36 : vector<1x1x64xf32> to vector<2x16x64xf32>
    %39 = arith.mulf %37, %38 : vector<2x16x64xf32>
    %40 = arith.addf %33, %39 : vector<2x16x64xf32>
    %cst = arith.constant 0.000000e+00 : f32
    %41 = vector.broadcast %cst : f32 to vector<2x9x64xf32>
    %c0_21 = arith.constant 0 : index
    %c0_22 = arith.constant 0 : index
    %c0_23 = arith.constant 0 : index
    %42 = vector.load %arg11[%c0_21, %c0_22, %c0_23] : memref<2x34x64xf32, #tpu.memory_space<vmem>>, vector<2x9x64xf32>
    tpu.vector_store %arg11[%c0_21, %c0_22, %c0_23], %41 {strides = array<i32>} : memref<2x34x64xf32, #tpu.memory_space<vmem>>, vector<2x9x64xf32>,
    %c0_24 = arith.constant 0 : index
    %c25 = arith.constant 25 : index
    %c0_25 = arith.constant 0 : index
    %43 = vector.load %arg11[%c0_24, %c25, %c0_25] : memref<2x34x64xf32, #tpu.memory_space<vmem>>, vector<2x9x64xf32>
    tpu.vector_store %arg11[%c0_24, %c25, %c0_25], %41 {strides = array<i32>} : memref<2x34x64xf32, #tpu.memory_space<vmem>>, vector<2x9x64xf32>,
    %c0_26 = arith.constant 0 : index
    %c9_27 = arith.constant 9 : index
    %c0_28 = arith.constant 0 : index
    %44 = vector.load %arg11[%c0_26, %c9_27, %c0_28] : memref<2x34x64xf32, #tpu.memory_space<vmem>>, vector<2x16x64xf32>
    tpu.vector_store %arg11[%c0_26, %c9_27, %c0_28], %40 {strides = array<i32>} : memref<2x34x64xf32, #tpu.memory_space<vmem>>, vector<2x16x64xf32>,
    %c0_29 = arith.constant 0 : index
    %c0_30 = arith.constant 0 : index
    %c0_31 = arith.constant 0 : index
    %45 = vector.load %arg11[%c0_29, %c0_30, %c0_31] : memref<2x34x64xf32, #tpu.memory_space<vmem>>, vector<2x16x64xf32>
    %c0_32 = arith.constant 0 : index
    %c0_33 = arith.constant 0 : index
    %46 = vector.load %arg3[%c0_32, %c0_33] : memref<19x64xf32, #tpu.memory_space<vmem>>, vector<1x64xf32>
    %47 = vector.shape_cast %46 : vector<1x64xf32> to vector<1x1x64xf32>
    %48 = vector.broadcast %47 : vector<1x1x64xf32> to vector<2x16x64xf32>
    %49 = arith.mulf %45, %48 : vector<2x16x64xf32>
    %c0_34 = arith.constant 0 : index
    %c1_35 = arith.constant 1 : index
    %c0_36 = arith.constant 0 : index
    %50 = vector.load %arg11[%c0_34, %c1_35, %c0_36] : memref<2x34x64xf32, #tpu.memory_space<vmem>>, vector<2x16x64xf32>
    %c1_37 = arith.constant 1 : index
    %c0_38 = arith.constant 0 : index
    %51 = vector.load %arg3[%c1_37, %c0_38] : memref<19x64xf32, #tpu.memory_space<vmem>>, vector<1x64xf32>
    %52 = vector.shape_cast %51 : vector<1x64xf32> to vector<1x1x64xf32>
    %53 = vector.broadcast %52 : vector<1x1x64xf32> to vector<2x16x64xf32>
    %54 = arith.mulf %50, %53 : vector<2x16x64xf32>
    %55 = arith.addf %49, %54 : vector<2x16x64xf32>
    %c0_39 = arith.constant 0 : index
    %c2_40 = arith.constant 2 : index
    %c0_41 = arith.constant 0 : index
    %56 = vector.load %arg11[%c0_39, %c2_40, %c0_41] : memref<2x34x64xf32, #tpu.memory_space<vmem>>, vector<2x16x64xf32>
    %c2_42 = arith.constant 2 : index
    %c0_43 = arith.constant 0 : index
    %57 = vector.load %arg3[%c2_42, %c0_43] : memref<19x64xf32, #tpu.memory_space<vmem>>, vector<1x64xf32>
    %58 = vector.shape_cast %57 : vector<1x64xf32> to vector<1x1x64xf32>
    %59 = vector.broadcast %58 : vector<1x1x64xf32> to vector<2x16x64xf32>
    %60 = arith.mulf %56, %59 : vector<2x16x64xf32>
    %61 = arith.addf %55, %60 : vector<2x16x64xf32>
    %c0_44 = arith.constant 0 : index
    %c3_45 = arith.constant 3 : index
    %c0_46 = arith.constant 0 : index
    %62 = vector.load %arg11[%c0_44, %c3_45, %c0_46] : memref<2x34x64xf32, #tpu.memory_space<vmem>>, vector<2x16x64xf32>
    %c3_47 = arith.constant 3 : index
    %c0_48 = arith.constant 0 : index
    %63 = vector.load %arg3[%c3_47, %c0_48] : memref<19x64xf32, #tpu.memory_space<vmem>>, vector<1x64xf32>
    %64 = vector.shape_cast %63 : vector<1x64xf32> to vector<1x1x64xf32>
    %65 = vector.broadcast %64 : vector<1x1x64xf32> to vector<2x16x64xf32>
    %66 = arith.mulf %62, %65 : vector<2x16x64xf32>
    %67 = arith.addf %61, %66 : vector<2x16x64xf32>
    %c0_49 = arith.constant 0 : index
    %c4_50 = arith.constant 4 : index
    %c0_51 = arith.constant 0 : index
    %68 = vector.load %arg11[%c0_49, %c4_50, %c0_51] : memref<2x34x64xf32, #tpu.memory_space<vmem>>, vector<2x16x64xf32>
    %c4_52 = arith.constant 4 : index
    %c0_53 = arith.constant 0 : index
    %69 = vector.load %arg3[%c4_52, %c0_53] : memref<19x64xf32, #tpu.memory_space<vmem>>, vector<1x64xf32>
    %70 = vector.shape_cast %69 : vector<1x64xf32> to vector<1x1x64xf32>
    %71 = vector.broadcast %70 : vector<1x1x64xf32> to vector<2x16x64xf32>
    %72 = arith.mulf %68, %71 : vector<2x16x64xf32>
    %73 = arith.addf %67, %72 : vector<2x16x64xf32>
    %c0_54 = arith.constant 0 : index
    %c5_55 = arith.constant 5 : index
    %c0_56 = arith.constant 0 : index
    %74 = vector.load %arg11[%c0_54, %c5_55, %c0_56] : memref<2x34x64xf32, #tpu.memory_space<vmem>>, vector<2x16x64xf32>
    %c5_57 = arith.constant 5 : index
    %c0_58 = arith.constant 0 : index
    %75 = vector.load %arg3[%c5_57, %c0_58] : memref<19x64xf32, #tpu.memory_space<vmem>>, vector<1x64xf32>
    %76 = vector.shape_cast %75 : vector<1x64xf32> to vector<1x1x64xf32>
    %77 = vector.broadcast %76 : vector<1x1x64xf32> to vector<2x16x64xf32>
    %78 = arith.mulf %74, %77 : vector<2x16x64xf32>
    %79 = arith.addf %73, %78 : vector<2x16x64xf32>
    %c0_59 = arith.constant 0 : index
    %c6_60 = arith.constant 6 : index
    %c0_61 = arith.constant 0 : index
    %80 = vector.load %arg11[%c0_59, %c6_60, %c0_61] : memref<2x34x64xf32, #tpu.memory_space<vmem>>, vector<2x16x64xf32>
    %c6_62 = arith.constant 6 : index
    %c0_63 = arith.constant 0 : index
    %81 = vector.load %arg3[%c6_62, %c0_63] : memref<19x64xf32, #tpu.memory_space<vmem>>, vector<1x64xf32>
    %82 = vector.shape_cast %81 : vector<1x64xf32> to vector<1x1x64xf32>
    %83 = vector.broadcast %82 : vector<1x1x64xf32> to vector<2x16x64xf32>
    %84 = arith.mulf %80, %83 : vector<2x16x64xf32>
    %85 = arith.addf %79, %84 : vector<2x16x64xf32>
    %c0_64 = arith.constant 0 : index
    %c7_65 = arith.constant 7 : index
    %c0_66 = arith.constant 0 : index
    %86 = vector.load %arg11[%c0_64, %c7_65, %c0_66] : memref<2x34x64xf32, #tpu.memory_space<vmem>>, vector<2x16x64xf32>
    %c7_67 = arith.constant 7 : index
    %c0_68 = arith.constant 0 : index
    %87 = vector.load %arg3[%c7_67, %c0_68] : memref<19x64xf32, #tpu.memory_space<vmem>>, vector<1x64xf32>
    %88 = vector.shape_cast %87 : vector<1x64xf32> to vector<1x1x64xf32>
    %89 = vector.broadcast %88 : vector<1x1x64xf32> to vector<2x16x64xf32>
    %90 = arith.mulf %86, %89 : vector<2x16x64xf32>
    %91 = arith.addf %85, %90 : vector<2x16x64xf32>
    %c0_69 = arith.constant 0 : index
    %c8_70 = arith.constant 8 : index
    %c0_71 = arith.constant 0 : index
    %92 = vector.load %arg11[%c0_69, %c8_70, %c0_71] : memref<2x34x64xf32, #tpu.memory_space<vmem>>, vector<2x16x64xf32>
    %c8_72 = arith.constant 8 : index
    %c0_73 = arith.constant 0 : index
    %93 = vector.load %arg3[%c8_72, %c0_73] : memref<19x64xf32, #tpu.memory_space<vmem>>, vector<1x64xf32>
    %94 = vector.shape_cast %93 : vector<1x64xf32> to vector<1x1x64xf32>
    %95 = vector.broadcast %94 : vector<1x1x64xf32> to vector<2x16x64xf32>
    %96 = arith.mulf %92, %95 : vector<2x16x64xf32>
    %97 = arith.addf %91, %96 : vector<2x16x64xf32>
    %c0_74 = arith.constant 0 : index
    %c9_75 = arith.constant 9 : index
    %c0_76 = arith.constant 0 : index
    %98 = vector.load %arg11[%c0_74, %c9_75, %c0_76] : memref<2x34x64xf32, #tpu.memory_space<vmem>>, vector<2x16x64xf32>
    %c9_77 = arith.constant 9 : index
    %c0_78 = arith.constant 0 : index
    %99 = vector.load %arg3[%c9_77, %c0_78] : memref<19x64xf32, #tpu.memory_space<vmem>>, vector<1x64xf32>
    %100 = vector.shape_cast %99 : vector<1x64xf32> to vector<1x1x64xf32>
    %101 = vector.broadcast %100 : vector<1x1x64xf32> to vector<2x16x64xf32>
    %102 = arith.mulf %98, %101 : vector<2x16x64xf32>
    %103 = arith.addf %97, %102 : vector<2x16x64xf32>
    %c0_79 = arith.constant 0 : index
    %c10 = arith.constant 10 : index
    %c0_80 = arith.constant 0 : index
    %104 = vector.load %arg11[%c0_79, %c10, %c0_80] : memref<2x34x64xf32, #tpu.memory_space<vmem>>, vector<2x16x64xf32>
    %c10_81 = arith.constant 10 : index
    %c0_82 = arith.constant 0 : index
    %105 = vector.load %arg3[%c10_81, %c0_82] : memref<19x64xf32, #tpu.memory_space<vmem>>, vector<1x64xf32>
    %106 = vector.shape_cast %105 : vector<1x64xf32> to vector<1x1x64xf32>
    %107 = vector.broadcast %106 : vector<1x1x64xf32> to vector<2x16x64xf32>
    %108 = arith.mulf %104, %107 : vector<2x16x64xf32>
    %109 = arith.addf %103, %108 : vector<2x16x64xf32>
    %c0_83 = arith.constant 0 : index
    %c11 = arith.constant 11 : index
    %c0_84 = arith.constant 0 : index
    %110 = vector.load %arg11[%c0_83, %c11, %c0_84] : memref<2x34x64xf32, #tpu.memory_space<vmem>>, vector<2x16x64xf32>
    %c11_85 = arith.constant 11 : index
    %c0_86 = arith.constant 0 : index
    %111 = vector.load %arg3[%c11_85, %c0_86] : memref<19x64xf32, #tpu.memory_space<vmem>>, vector<1x64xf32>
    %112 = vector.shape_cast %111 : vector<1x64xf32> to vector<1x1x64xf32>
    %113 = vector.broadcast %112 : vector<1x1x64xf32> to vector<2x16x64xf32>
    %114 = arith.mulf %110, %113 : vector<2x16x64xf32>
    %115 = arith.addf %109, %114 : vector<2x16x64xf32>
    %c0_87 = arith.constant 0 : index
    %c12 = arith.constant 12 : index
    %c0_88 = arith.constant 0 : index
    %116 = vector.load %arg11[%c0_87, %c12, %c0_88] : memref<2x34x64xf32, #tpu.memory_space<vmem>>, vector<2x16x64xf32>
    %c12_89 = arith.constant 12 : index
    %c0_90 = arith.constant 0 : index
    %117 = vector.load %arg3[%c12_89, %c0_90] : memref<19x64xf32, #tpu.memory_space<vmem>>, vector<1x64xf32>
    %118 = vector.shape_cast %117 : vector<1x64xf32> to vector<1x1x64xf32>
    %119 = vector.broadcast %118 : vector<1x1x64xf32> to vector<2x16x64xf32>
    %120 = arith.mulf %116, %119 : vector<2x16x64xf32>
    %121 = arith.addf %115, %120 : vector<2x16x64xf32>
    %c0_91 = arith.constant 0 : index
    %c13 = arith.constant 13 : index
    %c0_92 = arith.constant 0 : index
    %122 = vector.load %arg11[%c0_91, %c13, %c0_92] : memref<2x34x64xf32, #tpu.memory_space<vmem>>, vector<2x16x64xf32>
    %c13_93 = arith.constant 13 : index
    %c0_94 = arith.constant 0 : index
    %123 = vector.load %arg3[%c13_93, %c0_94] : memref<19x64xf32, #tpu.memory_space<vmem>>, vector<1x64xf32>
    %124 = vector.shape_cast %123 : vector<1x64xf32> to vector<1x1x64xf32>
    %125 = vector.broadcast %124 : vector<1x1x64xf32> to vector<2x16x64xf32>
    %126 = arith.mulf %122, %125 : vector<2x16x64xf32>
    %127 = arith.addf %121, %126 : vector<2x16x64xf32>
    %c0_95 = arith.constant 0 : index
    %c14 = arith.constant 14 : index
    %c0_96 = arith.constant 0 : index
    %128 = vector.load %arg11[%c0_95, %c14, %c0_96] : memref<2x34x64xf32, #tpu.memory_space<vmem>>, vector<2x16x64xf32>
    %c14_97 = arith.constant 14 : index
    %c0_98 = arith.constant 0 : index
    %129 = vector.load %arg3[%c14_97, %c0_98] : memref<19x64xf32, #tpu.memory_space<vmem>>, vector<1x64xf32>
    %130 = vector.shape_cast %129 : vector<1x64xf32> to vector<1x1x64xf32>
    %131 = vector.broadcast %130 : vector<1x1x64xf32> to vector<2x16x64xf32>
    %132 = arith.mulf %128, %131 : vector<2x16x64xf32>
    %133 = arith.addf %127, %132 : vector<2x16x64xf32>
    %c0_99 = arith.constant 0 : index
    %c15 = arith.constant 15 : index
    %c0_100 = arith.constant 0 : index
    %134 = vector.load %arg11[%c0_99, %c15, %c0_100] : memref<2x34x64xf32, #tpu.memory_space<vmem>>, vector<2x16x64xf32>
    %c15_101 = arith.constant 15 : index
    %c0_102 = arith.constant 0 : index
    %135 = vector.load %arg3[%c15_101, %c0_102] : memref<19x64xf32, #tpu.memory_space<vmem>>, vector<1x64xf32>
    %136 = vector.shape_cast %135 : vector<1x64xf32> to vector<1x1x64xf32>
    %137 = vector.broadcast %136 : vector<1x1x64xf32> to vector<2x16x64xf32>
    %138 = arith.mulf %134, %137 : vector<2x16x64xf32>
    %139 = arith.addf %133, %138 : vector<2x16x64xf32>
    %c0_103 = arith.constant 0 : index
    %c16 = arith.constant 16 : index
    %c0_104 = arith.constant 0 : index
    %140 = vector.load %arg11[%c0_103, %c16, %c0_104] : memref<2x34x64xf32, #tpu.memory_space<vmem>>, vector<2x16x64xf32>
    %c16_105 = arith.constant 16 : index
    %c0_106 = arith.constant 0 : index
    %141 = vector.load %arg3[%c16_105, %c0_106] : memref<19x64xf32, #tpu.memory_space<vmem>>, vector<1x64xf32>
    %142 = vector.shape_cast %141 : vector<1x64xf32> to vector<1x1x64xf32>
    %143 = vector.broadcast %142 : vector<1x1x64xf32> to vector<2x16x64xf32>
    %144 = arith.mulf %140, %143 : vector<2x16x64xf32>
    %145 = arith.addf %139, %144 : vector<2x16x64xf32>
    %c0_107 = arith.constant 0 : index
    %c17 = arith.constant 17 : index
    %c0_108 = arith.constant 0 : index
    %146 = vector.load %arg11[%c0_107, %c17, %c0_108] : memref<2x34x64xf32, #tpu.memory_space<vmem>>, vector<2x16x64xf32>
    %c17_109 = arith.constant 17 : index
    %c0_110 = arith.constant 0 : index
    %147 = vector.load %arg3[%c17_109, %c0_110] : memref<19x64xf32, #tpu.memory_space<vmem>>, vector<1x64xf32>
    %148 = vector.shape_cast %147 : vector<1x64xf32> to vector<1x1x64xf32>
    %149 = vector.broadcast %148 : vector<1x1x64xf32> to vector<2x16x64xf32>
    %150 = arith.mulf %146, %149 : vector<2x16x64xf32>
    %151 = arith.addf %145, %150 : vector<2x16x64xf32>
    %c0_111 = arith.constant 0 : index
    %c18 = arith.constant 18 : index
    %c0_112 = arith.constant 0 : index
    %152 = vector.load %arg11[%c0_111, %c18, %c0_112] : memref<2x34x64xf32, #tpu.memory_space<vmem>>, vector<2x16x64xf32>
    %c18_113 = arith.constant 18 : index
    %c0_114 = arith.constant 0 : index
    %153 = vector.load %arg3[%c18_113, %c0_114] : memref<19x64xf32, #tpu.memory_space<vmem>>, vector<1x64xf32>
    %154 = vector.shape_cast %153 : vector<1x64xf32> to vector<1x1x64xf32>
    %155 = vector.broadcast %154 : vector<1x1x64xf32> to vector<2x16x64xf32>
    %156 = arith.mulf %152, %155 : vector<2x16x64xf32>
    %157 = arith.addf %151, %156 : vector<2x16x64xf32>
    %158 = vector.shape_cast %40 : vector<2x16x64xf32> to vector<32x64xf32>
    %159 = vector.shape_cast %157 : vector<2x16x64xf32> to vector<32x64xf32>
    %160 = arith.truncf %159 : vector<32x64xf32> to vector<32x64xbf16>
    %c0_115 = arith.constant 0 : index
    %c0_116 = arith.constant 0 : index
    %c0_117 = arith.constant 0 : index
    %161 = vector.load %arg4[%c0_115, %c0_116, %c0_117] : memref<3x64x64xbf16, #tpu.memory_space<vmem>>, vector<1x64x64xbf16>
    %162 = vector.shape_cast %161 : vector<1x64x64xbf16> to vector<64x64xbf16>
    %cst_118 = arith.constant dense<0.000000e+00> : vector<32x64xf32>
    %163 = tpu.matmul %160, %162, %cst_118 {dimension_numbers = #tpu.dot_dimension_numbers<[1], [0], [0], [1], [0, 0, 1, 1], [], []>} : vector<32x64xbf16>, vector<64x64xbf16>, vector<32x64xf32> -> vector<32x64xf32>
    %164 = arith.addf %158, %163 : vector<32x64xf32>
    %165 = vector.broadcast %1 : vector<1x64xf32> to vector<32x64xf32>
    %166 = arith.addf %164, %165 : vector<32x64xf32>
    %cst_119 = arith.constant dense<0.000000e+00> : vector<32xf32>
    %167 = vector.multi_reduction <add>, %166, %cst_119 [1] : vector<32x64xf32> to vector<32xf32>
    %168 = vector.shape_cast %167 : vector<32xf32> to vector<32x1xf32>
    %cst_120 = arith.constant 6.400000e+01 : f32
    %169 = vector.broadcast %cst_120 : f32 to vector<32x1xf32>
    %170 = arith.divf %168, %169 : vector<32x1xf32>
    %171 = vector.broadcast %170 : vector<32x1xf32> to vector<32x64xf32>
    %172 = arith.subf %166, %171 : vector<32x64xf32>
    %173 = arith.mulf %172, %172 : vector<32x64xf32>
    %cst_121 = arith.constant dense<0.000000e+00> : vector<32xf32>
    %174 = vector.multi_reduction <add>, %173, %cst_121 [1] : vector<32x64xf32> to vector<32xf32>
    %175 = vector.shape_cast %174 : vector<32xf32> to vector<32x1xf32>
    %cst_122 = arith.constant 6.400000e+01 : f32
    %176 = vector.broadcast %cst_122 : f32 to vector<32x1xf32>
    %177 = arith.divf %175, %176 : vector<32x1xf32>
    %cst_123 = arith.constant 9.99999974E-6 : f32
    %178 = vector.broadcast %cst_123 : f32 to vector<32x1xf32>
    %179 = arith.addf %177, %178 : vector<32x1xf32>
    %180 = math.rsqrt %179 : vector<32x1xf32>
    %181 = vector.broadcast %180 : vector<32x1xf32> to vector<32x64xf32>
    %182 = arith.mulf %172, %181 : vector<32x64xf32>
    %183 = vector.broadcast %2 : vector<1x64xf32> to vector<32x64xf32>
    %184 = arith.mulf %182, %183 : vector<32x64xf32>
    %185 = vector.broadcast %3 : vector<1x64xf32> to vector<32x64xf32>
    %186 = arith.addf %184, %185 : vector<32x64xf32>
    %187 = arith.truncf %186 : vector<32x64xf32> to vector<32x64xbf16>
    %c0_124 = arith.constant 0 : index
    %c0_125 = arith.constant 0 : index
    %c0_126 = arith.constant 0 : index
    %188 = vector.load %arg5[%c0_124, %c0_125, %c0_126] : memref<2x64x64xbf16, #tpu.memory_space<vmem>>, vector<1x64x64xbf16>
    %189 = vector.shape_cast %188 : vector<1x64x64xbf16> to vector<64x64xbf16>
    %cst_127 = arith.constant dense<0.000000e+00> : vector<32x64xf32>
    %190 = tpu.matmul %187, %189, %cst_127 {dimension_numbers = #tpu.dot_dimension_numbers<[1], [0], [0], [1], [0, 0, 1, 1], [], []>} : vector<32x64xbf16>, vector<64x64xbf16>, vector<32x64xf32> -> vector<32x64xf32>
    %c1_128 = arith.constant 1 : index
    %c0_129 = arith.constant 0 : index
    %c0_130 = arith.constant 0 : index
    %191 = vector.load %arg5[%c1_128, %c0_129, %c0_130] : memref<2x64x64xbf16, #tpu.memory_space<vmem>>, vector<1x64x64xbf16>
    %192 = vector.shape_cast %191 : vector<1x64x64xbf16> to vector<64x64xbf16>
    %cst_131 = arith.constant dense<0.000000e+00> : vector<32x64xf32>
    %193 = tpu.matmul %187, %192, %cst_131 {dimension_numbers = #tpu.dot_dimension_numbers<[1], [0], [0], [1], [0, 0, 1, 1], [], []>} : vector<32x64xbf16>, vector<64x64xbf16>, vector<32x64xf32> -> vector<32x64xf32>
    %194 = arith.truncf %190 : vector<32x64xf32> to vector<32x64xbf16>
    %195 = arith.truncf %193 : vector<32x64xf32> to vector<32x64xbf16>
    %c0_132 = arith.constant 0 : index
    %c0_133 = arith.constant 0 : index
    %c0_134 = arith.constant 0 : index
    %196 = vector.load %arg6[%c0_132, %c0_133, %c0_134] : memref<2x32x64xbf16, #tpu.memory_space<vmem>>, vector<1x32x64xbf16>
    %197 = vector.shape_cast %196 : vector<1x32x64xbf16> to vector<32x64xbf16>
    %c1_135 = arith.constant 1 : index
    %c0_136 = arith.constant 0 : index
    %c0_137 = arith.constant 0 : index
    %198 = vector.load %arg6[%c1_135, %c0_136, %c0_137] : memref<2x32x64xbf16, #tpu.memory_space<vmem>>, vector<1x32x64xbf16>
    %199 = vector.shape_cast %198 : vector<1x32x64xbf16> to vector<32x64xbf16>
    %200 = arith.extf %199 : vector<32x64xbf16> to vector<32x64xf32>
    %c0_138 = arith.constant 0 : index
    %c0_139 = arith.constant 0 : index
    %201 = vector.load %arg7[%c0_138, %c0_139] : memref<2x32xbf16, #tpu.memory_space<vmem>>, vector<2x32xbf16>
    %202 = vector.extract_strided_slice %194 {offsets = [0, 0], sizes = [16, 64], strides = [1, 1]} : vector<32x64xbf16> to vector<16x64xbf16>
    %203 = vector.extract_strided_slice %195 {offsets = [0, 0], sizes = [16, 64], strides = [1, 1]} : vector<32x64xbf16> to vector<16x64xbf16>
    %cst_140 = arith.constant dense<0.000000e+00> : vector<32x16xf32>
    %204 = tpu.matmul %197, %202, %cst_140 {dimension_numbers = #tpu.dot_dimension_numbers<[1], [1], [0], [0], [0, 0, 1, 0], [], []>} : vector<32x64xbf16>, vector<16x64xbf16>, vector<32x16xf32> -> vector<32x16xf32>
    %cst_141 = arith.constant 5.000000e-01 : f32
    %205 = vector.broadcast %cst_141 : f32 to vector<32x16xf32>
    %206 = arith.mulf %204, %205 : vector<32x16xf32>
    %cst_142 = arith.constant -2.77258873 : f32
    %207 = vector.broadcast %cst_142 : f32 to vector<32x16xf32>
    %208 = arith.addf %206, %207 : vector<32x16xf32>
    %209 = arith.negf %208 : vector<32x16xf32>
    %210 = math.exp %209 : vector<32x16xf32>
    %cst_143 = arith.constant 1.000000e+00 : f32
    %211 = vector.broadcast %cst_143 : f32 to vector<32x16xf32>
    %212 = arith.addf %211, %210 : vector<32x16xf32>
    %213 = arith.divf %211, %212 : vector<32x16xf32>
    %cst_144 = arith.constant 0.000000e+00 : f32
    %214 = vector.broadcast %cst_144 : f32 to vector<32x112xf32>
    %215 = tpu.concatenate %213, %214 in 1 : vector<32x16xf32>, vector<32x112xf32> -> vector<32x128xf32>
    %c0_145 = arith.constant 0 : index
    %c0_146 = arith.constant 0 : index
    %c0_147 = arith.constant 0 : index
    %216 = vector.load %arg10[%c0_145, %c0_146, %c0_147] : memref<2x32x128xf32, #tpu.memory_space<vmem>>, vector<1x32x128xf32>
    %217 = vector.shape_cast %216 : vector<1x32x128xf32> to vector<32x128xf32>
    %218 = vector.shape_cast %215 : vector<32x128xf32> to vector<1x32x128xf32>
    tpu.vector_store %arg10[%c0_145, %c0_146, %c0_147], %218 {strides = array<i32>} : memref<2x32x128xf32, #tpu.memory_space<vmem>>, vector<1x32x128xf32>,
    %219 = arith.truncf %213 : vector<32x16xf32> to vector<32x16xbf16>
    %cst_148 = arith.constant dense<0.000000e+00> : vector<32x64xf32>
    %220 = tpu.matmul %219, %203, %cst_148 {dimension_numbers = #tpu.dot_dimension_numbers<[1], [0], [0], [1], [0, 0, 1, 1], [], []>} : vector<32x16xbf16>, vector<16x64xbf16>, vector<32x64xf32> -> vector<32x64xf32>
    %221 = arith.mulf %220, %200 : vector<32x64xf32>
    %222 = arith.truncf %221 : vector<32x64xf32> to vector<32x64xbf16>
    %cst_149 = arith.constant dense<0.000000e+00> : vector<2x64xf32>
    %223 = tpu.matmul %201, %222, %cst_149 {dimension_numbers = #tpu.dot_dimension_numbers<[1], [0], [0], [1], [0, 0, 1, 1], [], []>} : vector<2x32xbf16>, vector<32x64xbf16>, vector<2x64xf32> -> vector<2x64xf32>
    %224 = arith.truncf %223 : vector<2x64xf32> to vector<2x64xbf16>
    %c1_150 = arith.constant 1 : index
    %c0_151 = arith.constant 0 : index
    %c0_152 = arith.constant 0 : index
    %225 = vector.load %arg4[%c1_150, %c0_151, %c0_152] : memref<3x64x64xbf16, #tpu.memory_space<vmem>>, vector<1x64x64xbf16>
    %226 = vector.shape_cast %225 : vector<1x64x64xbf16> to vector<64x64xbf16>
    %cst_153 = arith.constant dense<0.000000e+00> : vector<2x64xf32>
    %227 = tpu.matmul %224, %226, %cst_153 {dimension_numbers = #tpu.dot_dimension_numbers<[1], [0], [0], [1], [0, 0, 1, 1], [], []>} : vector<2x64xbf16>, vector<64x64xbf16>, vector<2x64xf32> -> vector<2x64xf32>
    %228 = vector.broadcast %4 : vector<1x64xf32> to vector<2x64xf32>
    %229 = arith.addf %227, %228 : vector<2x64xf32>
    %cst_154 = arith.constant dense<0.000000e+00> : vector<2xf32>
    %230 = vector.multi_reduction <add>, %229, %cst_154 [1] : vector<2x64xf32> to vector<2xf32>
    %231 = vector.shape_cast %230 : vector<2xf32> to vector<2x1xf32>
    %cst_155 = arith.constant 6.400000e+01 : f32
    %232 = vector.broadcast %cst_155 : f32 to vector<2x1xf32>
    %233 = arith.divf %231, %232 : vector<2x1xf32>
    %234 = vector.broadcast %233 : vector<2x1xf32> to vector<2x64xf32>
    %235 = arith.subf %229, %234 : vector<2x64xf32>
    %236 = arith.mulf %235, %235 : vector<2x64xf32>
    %cst_156 = arith.constant dense<0.000000e+00> : vector<2xf32>
    %237 = vector.multi_reduction <add>, %236, %cst_156 [1] : vector<2x64xf32> to vector<2xf32>
    %238 = vector.shape_cast %237 : vector<2xf32> to vector<2x1xf32>
    %cst_157 = arith.constant 6.400000e+01 : f32
    %239 = vector.broadcast %cst_157 : f32 to vector<2x1xf32>
    %240 = arith.divf %238, %239 : vector<2x1xf32>
    %cst_158 = arith.constant 9.99999974E-6 : f32
    %241 = vector.broadcast %cst_158 : f32 to vector<2x1xf32>
    %242 = arith.addf %240, %241 : vector<2x1xf32>
    %243 = math.rsqrt %242 : vector<2x1xf32>
    %244 = vector.broadcast %243 : vector<2x1xf32> to vector<2x64xf32>
    %245 = arith.mulf %235, %244 : vector<2x64xf32>
    %246 = vector.broadcast %5 : vector<1x64xf32> to vector<2x64xf32>
    %247 = arith.mulf %245, %246 : vector<2x64xf32>
    %248 = vector.broadcast %6 : vector<1x64xf32> to vector<2x64xf32>
    %249 = arith.addf %247, %248 : vector<2x64xf32>
    %250 = arith.truncf %249 : vector<2x64xf32> to vector<2x64xbf16>
    %c2_159 = arith.constant 2 : index
    %c0_160 = arith.constant 0 : index
    %c0_161 = arith.constant 0 : index
    %251 = vector.load %arg4[%c2_159, %c0_160, %c0_161] : memref<3x64x64xbf16, #tpu.memory_space<vmem>>, vector<1x64x64xbf16>
    %252 = vector.shape_cast %251 : vector<1x64x64xbf16> to vector<64x64xbf16>
    %cst_162 = arith.constant dense<0.000000e+00> : vector<2x64xf32>
    %253 = tpu.matmul %250, %252, %cst_162 {dimension_numbers = #tpu.dot_dimension_numbers<[1], [0], [0], [1], [0, 0, 1, 1], [], []>} : vector<2x64xbf16>, vector<64x64xbf16>, vector<2x64xf32> -> vector<2x64xf32>
    %254 = vector.broadcast %7 : vector<1x64xf32> to vector<2x64xf32>
    %255 = arith.addf %253, %254 : vector<2x64xf32>
    %cst_163 = arith.constant 0.000000e+00 : f32
    %256 = vector.broadcast %cst_163 : f32 to vector<2x64xf32>
    %257 = arith.maximumf %255, %256 : vector<2x64xf32>
    %258 = vector.broadcast %8 : vector<1x64xf32> to vector<2x64xf32>
    %259 = arith.mulf %257, %258 : vector<2x64xf32>
    %cst_164 = arith.constant dense<0.000000e+00> : vector<2xf32>
    %260 = vector.multi_reduction <add>, %259, %cst_164 [1] : vector<2x64xf32> to vector<2xf32>
    %261 = vector.shape_cast %260 : vector<2xf32> to vector<2x1xf32>
    %262 = vector.broadcast %9 : vector<1x1xf32> to vector<2x1xf32>
    %263 = arith.addf %261, %262 : vector<2x1xf32>
    %264 = vector.shape_cast %263 : vector<2x1xf32> to vector<2x1xf32>
    %265 = vector.broadcast %264 : vector<2x1xf32> to vector<2x128xf32>
    %c0_165 = arith.constant 0 : index
    %c0_166 = arith.constant 0 : index
    %c0_167 = arith.constant 0 : index
    %266 = vector.load %arg9[%c0_165, %c0_166, %c0_167] : memref<2x2x128xf32, #tpu.memory_space<vmem>>, vector<1x2x128xf32>
    %267 = vector.shape_cast %266 : vector<1x2x128xf32> to vector<2x128xf32>
    %268 = vector.shape_cast %265 : vector<2x128xf32> to vector<1x2x128xf32>
    tpu.vector_store %arg9[%c0_165, %c0_166, %c0_167], %268 {strides = array<i32>} : memref<2x2x128xf32, #tpu.memory_space<vmem>>, vector<1x2x128xf32>,
    %269 = vector.extract_strided_slice %194 {offsets = [16, 0], sizes = [16, 64], strides = [1, 1]} : vector<32x64xbf16> to vector<16x64xbf16>
    %270 = vector.extract_strided_slice %195 {offsets = [16, 0], sizes = [16, 64], strides = [1, 1]} : vector<32x64xbf16> to vector<16x64xbf16>
    %cst_168 = arith.constant dense<0.000000e+00> : vector<32x16xf32>
    %271 = tpu.matmul %197, %269, %cst_168 {dimension_numbers = #tpu.dot_dimension_numbers<[1], [1], [0], [0], [0, 0, 1, 0], [], []>} : vector<32x64xbf16>, vector<16x64xbf16>, vector<32x16xf32> -> vector<32x16xf32>
    %cst_169 = arith.constant 5.000000e-01 : f32
    %272 = vector.broadcast %cst_169 : f32 to vector<32x16xf32>
    %273 = arith.mulf %271, %272 : vector<32x16xf32>
    %cst_170 = arith.constant -2.77258873 : f32
    %274 = vector.broadcast %cst_170 : f32 to vector<32x16xf32>
    %275 = arith.addf %273, %274 : vector<32x16xf32>
    %276 = arith.negf %275 : vector<32x16xf32>
    %277 = math.exp %276 : vector<32x16xf32>
    %cst_171 = arith.constant 1.000000e+00 : f32
    %278 = vector.broadcast %cst_171 : f32 to vector<32x16xf32>
    %279 = arith.addf %278, %277 : vector<32x16xf32>
    %280 = arith.divf %278, %279 : vector<32x16xf32>
    %cst_172 = arith.constant 0.000000e+00 : f32
    %281 = vector.broadcast %cst_172 : f32 to vector<32x112xf32>
    %282 = tpu.concatenate %280, %281 in 1 : vector<32x16xf32>, vector<32x112xf32> -> vector<32x128xf32>
    %c1_173 = arith.constant 1 : index
    %c0_174 = arith.constant 0 : index
    %c0_175 = arith.constant 0 : index
    %283 = vector.load %arg10[%c1_173, %c0_174, %c0_175] : memref<2x32x128xf32, #tpu.memory_space<vmem>>, vector<1x32x128xf32>
    %284 = vector.shape_cast %283 : vector<1x32x128xf32> to vector<32x128xf32>
    %285 = vector.shape_cast %282 : vector<32x128xf32> to vector<1x32x128xf32>
    tpu.vector_store %arg10[%c1_173, %c0_174, %c0_175], %285 {strides = array<i32>} : memref<2x32x128xf32, #tpu.memory_space<vmem>>, vector<1x32x128xf32>,
    %286 = arith.truncf %280 : vector<32x16xf32> to vector<32x16xbf16>
    %cst_176 = arith.constant dense<0.000000e+00> : vector<32x64xf32>
    %287 = tpu.matmul %286, %270, %cst_176 {dimension_numbers = #tpu.dot_dimension_numbers<[1], [0], [0], [1], [0, 0, 1, 1], [], []>} : vector<32x16xbf16>, vector<16x64xbf16>, vector<32x64xf32> -> vector<32x64xf32>
    %288 = arith.mulf %287, %200 : vector<32x64xf32>
    %289 = arith.truncf %288 : vector<32x64xf32> to vector<32x64xbf16>
    %cst_177 = arith.constant dense<0.000000e+00> : vector<2x64xf32>
    %290 = tpu.matmul %201, %289, %cst_177 {dimension_numbers = #tpu.dot_dimension_numbers<[1], [0], [0], [1], [0, 0, 1, 1], [], []>} : vector<2x32xbf16>, vector<32x64xbf16>, vector<2x64xf32> -> vector<2x64xf32>
    %291 = arith.truncf %290 : vector<2x64xf32> to vector<2x64xbf16>
    %c1_178 = arith.constant 1 : index
    %c0_179 = arith.constant 0 : index
    %c0_180 = arith.constant 0 : index
    %292 = vector.load %arg4[%c1_178, %c0_179, %c0_180] : memref<3x64x64xbf16, #tpu.memory_space<vmem>>, vector<1x64x64xbf16>
    %293 = vector.shape_cast %292 : vector<1x64x64xbf16> to vector<64x64xbf16>
    %cst_181 = arith.constant dense<0.000000e+00> : vector<2x64xf32>
    %294 = tpu.matmul %291, %293, %cst_181 {dimension_numbers = #tpu.dot_dimension_numbers<[1], [0], [0], [1], [0, 0, 1, 1], [], []>} : vector<2x64xbf16>, vector<64x64xbf16>, vector<2x64xf32> -> vector<2x64xf32>
    %295 = vector.broadcast %4 : vector<1x64xf32> to vector<2x64xf32>
    %296 = arith.addf %294, %295 : vector<2x64xf32>
    %cst_182 = arith.constant dense<0.000000e+00> : vector<2xf32>
    %297 = vector.multi_reduction <add>, %296, %cst_182 [1] : vector<2x64xf32> to vector<2xf32>
    %298 = vector.shape_cast %297 : vector<2xf32> to vector<2x1xf32>
    %cst_183 = arith.constant 6.400000e+01 : f32
    %299 = vector.broadcast %cst_183 : f32 to vector<2x1xf32>
    %300 = arith.divf %298, %299 : vector<2x1xf32>
    %301 = vector.broadcast %300 : vector<2x1xf32> to vector<2x64xf32>
    %302 = arith.subf %296, %301 : vector<2x64xf32>
    %303 = arith.mulf %302, %302 : vector<2x64xf32>
    %cst_184 = arith.constant dense<0.000000e+00> : vector<2xf32>
    %304 = vector.multi_reduction <add>, %303, %cst_184 [1] : vector<2x64xf32> to vector<2xf32>
    %305 = vector.shape_cast %304 : vector<2xf32> to vector<2x1xf32>
    %cst_185 = arith.constant 6.400000e+01 : f32
    %306 = vector.broadcast %cst_185 : f32 to vector<2x1xf32>
    %307 = arith.divf %305, %306 : vector<2x1xf32>
    %cst_186 = arith.constant 9.99999974E-6 : f32
    %308 = vector.broadcast %cst_186 : f32 to vector<2x1xf32>
    %309 = arith.addf %307, %308 : vector<2x1xf32>
    %310 = math.rsqrt %309 : vector<2x1xf32>
    %311 = vector.broadcast %310 : vector<2x1xf32> to vector<2x64xf32>
    %312 = arith.mulf %302, %311 : vector<2x64xf32>
    %313 = vector.broadcast %5 : vector<1x64xf32> to vector<2x64xf32>
    %314 = arith.mulf %312, %313 : vector<2x64xf32>
    %315 = vector.broadcast %6 : vector<1x64xf32> to vector<2x64xf32>
    %316 = arith.addf %314, %315 : vector<2x64xf32>
    %317 = arith.truncf %316 : vector<2x64xf32> to vector<2x64xbf16>
    %c2_187 = arith.constant 2 : index
    %c0_188 = arith.constant 0 : index
    %c0_189 = arith.constant 0 : index
    %318 = vector.load %arg4[%c2_187, %c0_188, %c0_189] : memref<3x64x64xbf16, #tpu.memory_space<vmem>>, vector<1x64x64xbf16>
    %319 = vector.shape_cast %318 : vector<1x64x64xbf16> to vector<64x64xbf16>
    %cst_190 = arith.constant dense<0.000000e+00> : vector<2x64xf32>
    %320 = tpu.matmul %317, %319, %cst_190 {dimension_numbers = #tpu.dot_dimension_numbers<[1], [0], [0], [1], [0, 0, 1, 1], [], []>} : vector<2x64xbf16>, vector<64x64xbf16>, vector<2x64xf32> -> vector<2x64xf32>
    %321 = vector.broadcast %7 : vector<1x64xf32> to vector<2x64xf32>
    %322 = arith.addf %320, %321 : vector<2x64xf32>
    %cst_191 = arith.constant 0.000000e+00 : f32
    %323 = vector.broadcast %cst_191 : f32 to vector<2x64xf32>
    %324 = arith.maximumf %322, %323 : vector<2x64xf32>
    %325 = vector.broadcast %8 : vector<1x64xf32> to vector<2x64xf32>
    %326 = arith.mulf %324, %325 : vector<2x64xf32>
    %cst_192 = arith.constant dense<0.000000e+00> : vector<2xf32>
    %327 = vector.multi_reduction <add>, %326, %cst_192 [1] : vector<2x64xf32> to vector<2xf32>
    %328 = vector.shape_cast %327 : vector<2xf32> to vector<2x1xf32>
    %329 = vector.broadcast %9 : vector<1x1xf32> to vector<2x1xf32>
    %330 = arith.addf %328, %329 : vector<2x1xf32>
    %331 = vector.shape_cast %330 : vector<2x1xf32> to vector<2x1xf32>
    %332 = vector.broadcast %331 : vector<2x1xf32> to vector<2x128xf32>
    %c1_193 = arith.constant 1 : index
    %c0_194 = arith.constant 0 : index
    %c0_195 = arith.constant 0 : index
    %333 = vector.load %arg9[%c1_193, %c0_194, %c0_195] : memref<2x2x128xf32, #tpu.memory_space<vmem>>, vector<1x2x128xf32>
    %334 = vector.shape_cast %333 : vector<1x2x128xf32> to vector<2x128xf32>
    %335 = vector.shape_cast %332 : vector<2x128xf32> to vector<1x2x128xf32>
    tpu.vector_store %arg9[%c1_193, %c0_194, %c0_195], %335 {strides = array<i32>} : memref<2x2x128xf32, #tpu.memory_space<vmem>>, vector<1x2x128xf32>,
    return
  }
  func.func @transform_0(%arg0: i32) -> (i32, i32, i32) {
    %c0_i32 = arith.constant 0 : i32
    %c0_i32_0 = arith.constant 0 : i32
    %c0_i32_1 = arith.constant 0 : i32
    return %arg0, %c0_i32, %c0_i32_0 : i32, i32, i32
  }
  func.func @transform_1(%arg0: i32) -> (i32, i32) {
    %c0_i32 = arith.constant 0 : i32
    %c0_i32_0 = arith.constant 0 : i32
    %c0_i32_1 = arith.constant 0 : i32
    return %c0_i32, %c0_i32_0 : i32, i32
  }
  func.func @transform_2(%arg0: i32) -> (i32, i32) {
    %c0_i32 = arith.constant 0 : i32
    %c0_i32_0 = arith.constant 0 : i32
    %c0_i32_1 = arith.constant 0 : i32
    return %c0_i32, %c0_i32_0 : i32, i32
  }
  func.func @transform_3(%arg0: i32) -> (i32, i32, i32) {
    %c0_i32 = arith.constant 0 : i32
    %c0_i32_0 = arith.constant 0 : i32
    %c0_i32_1 = arith.constant 0 : i32
    %c0_i32_2 = arith.constant 0 : i32
    return %c0_i32, %c0_i32_0, %c0_i32_1 : i32, i32, i32
  }
  func.func @transform_4(%arg0: i32) -> (i32, i32, i32) {
    %c0_i32 = arith.constant 0 : i32
    %c0_i32_0 = arith.constant 0 : i32
    %c0_i32_1 = arith.constant 0 : i32
    %c0_i32_2 = arith.constant 0 : i32
    return %c0_i32, %c0_i32_0, %c0_i32_1 : i32, i32, i32
  }
  func.func @transform_5(%arg0: i32) -> (i32, i32, i32) {
    %c0_i32 = arith.constant 0 : i32
    %c0_i32_0 = arith.constant 0 : i32
    %c0_i32_1 = arith.constant 0 : i32
    %c0_i32_2 = arith.constant 0 : i32
    return %c0_i32, %c0_i32_0, %c0_i32_1 : i32, i32, i32
  }
  func.func @transform_6(%arg0: i32) -> (i32, i32) {
    %c0_i32 = arith.constant 0 : i32
    %c0_i32_0 = arith.constant 0 : i32
    %c0_i32_1 = arith.constant 0 : i32
    return %c0_i32, %c0_i32_0 : i32, i32
  }
  func.func @transform_7(%arg0: i32) -> (i32, i32) {
    %c0_i32 = arith.constant 0 : i32
    %c0_i32_0 = arith.constant 0 : i32
    %c0_i32_1 = arith.constant 0 : i32
    return %c0_i32, %c0_i32_0 : i32, i32
  }
  func.func @transform_8(%arg0: i32) -> (i32, i32, i32) {
    %c0_i32 = arith.constant 0 : i32
    %c0_i32_0 = arith.constant 0 : i32
    %c0_i32_1 = arith.constant 0 : i32
    return %arg0, %c0_i32, %c0_i32_0 : i32, i32, i32
  }
  func.func @transform_9(%arg0: i32) -> (i32, i32, i32) {
    %c0_i32 = arith.constant 0 : i32
    %c0_i32_0 = arith.constant 0 : i32
    %c0_i32_1 = arith.constant 0 : i32
    return %arg0, %c0_i32, %c0_i32_0 : i32, i32, i32
  }
}

</mosaic_0001>

<bundles_post_ra>
// kernel: mil_forward.1
= control target key start
LH: loop header
LB: loop body
LE: loop exit
PB: predicated region body
PF: predicated region fallthrough
CT: control target
= control target key end

     0   :  { %v2104_v2 = vmov 0   ;;  %v2105_v5 = vmov 1   ;;  %v2106_v6 = vmov 2   ;;  %s2684_s0 = inlined_call_operand.vmem [shape: f32[2,16,4], index: 0, kind: input, shape index: {}]   ;;  %s2685_s1 = inlined_call_operand.vmem [shape: f32[4,64], index: 1, kind: input, shape index: {}]   ;;  %s2686_s2 = inlined_call_operand.vmem [shape: f32[19,64], index: 2, kind: input, shape index: {}]   ;;  %s2687_s3 = inlined_call_operand.vmem [shape: bf16[3,64,64], index: 3, kind: input, shape index: {}]   ;;  %s2688_s4 = inlined_call_operand.vmem [shape: bf16[2,64,64], index: 4, kind: input, shape index: {}]   ;;  %s2689_s5 = inlined_call_operand.vmem [shape: bf16[2,32,64], index: 5, kind: input, shape index: {}]   ;;  %s2690_s6 = inlined_call_operand.vmem [shape: bf16[2,32], index: 6, kind: input, shape index: {}]   ;;  %s2691_s7 = inlined_call_operand.vmem [shape: f32[10,64], index: 7, kind: input, shape index: {}]   ;;  %s2692_s8 = inlined_call_operand.vmem [shape: f32[2,2,128], index: 8, kind: output, shape index: {0}]   ;;  %s2693_s9 = inlined_call_operand.hbm [shape: f32[2,32,128], index: 9, kind: output, shape index: {1}]  }
   0x1   :  { %v44_v0 = vld [vmem:[%s2684_s0 + $0x8] sm:$0xff]  ;;  %v43_v1 = vld [vmem:[%s2684_s0] sm:$0xff]  ;;  %1997 = vset.pattern.permute.xlu1 %v2104_v2  ;;  %1996 = vset.pattern.permute.xlu0 %v2104_v2  ;;  %v45_v3 = vld [vmem:[%s2684_s0 + $0x10] sm:$0xff] }
   0x2   :  { %59 = vperm.xlu1 %1997, %v44_v0   ;;  %54 = vperm.xlu0 %1996, %v43_v1   ;;  %v46_v4 = vld [vmem:[%s2684_s0 + $0x18] sm:$0xff] }
   0x6   :  { %1998 = vset.pattern.permute.xlu1 %v2105_v5  ;;  %64 = vperm.xlu0 %1996, %v45_v3  }
   0x7   :  { %86 = vperm.xlu1 %1998, %v43_v1  }
   0xa   :  { %69 = vperm.xlu0 %1996, %v46_v4  }
   0xb   :  { %94 = vperm.xlu1 %1998, %v45_v3  }
   0xe   :  { %1999 = vset.pattern.permute.xlu0 %v2105_v5 }
   0xf   :  { %2000 = vset.pattern.permute.xlu1 %v2106_v6  ;;  %90 = vperm.xlu0 %1999, %v44_v0  }
  0x10   :  { %115 = vperm.xlu1 %2000, %v43_v1  }
  0x13   :  { %2002 = vset.pattern.permute.xlu0 %v2106_v6 }
  0x14   :  { %2001 = vset.pattern.permute.xlu1 %v2105_v5  ;;  %123 = vperm.xlu0 %2002, %v45_v3  }
  0x15   :  { %98 = vperm.xlu1 %2001, %v46_v4  }
  0x16   :  { %15 = vsyncpa [#allocation4], 0  ;;  %vm171_vm0 = vcmask 523264   ;;  %v2107_v7 = vmov 3   ;;  %vm173_vm1 = vcmask 516096   ;;  %v2108_v8 = vmov 0.0  }
  0x17   :  { %172 = vst.msk [vmem:[#allocation2] sm:$0xff] %vm171_vm0, %v2108_v8  ;;  %175 = vst.msk [vmem:[#allocation2 + $0x28] sm:$0xff] %vm171_vm0, %v2108_v8  ;;  %v2008_v9 = vld [vmem:[%s2687_s3 + $0x18] sm:$0xff]   ;;  %v2009_v10 = vld [vmem:[%s2687_s3 + $0x10] sm:$0xff]   ;;  %vm941_vm2 = vcmask 130048   ;;  %vm2109_vm3 = vmmov 0  }
  0x18   :  { %127 = vperm.xlu0 %2002, %v46_v4   ;;  %174 = vst.msk [vmem:[#allocation2 + $0x8] sm:$0x1] %vm173_vm1, %v2108_v8  ;;  %176 = vst.msk [vmem:[#allocation2 + $0x30] sm:$0x1] %vm173_vm1, %v2108_v8  ;;  %1861 = vmatprep.subr.bf16.mxu0 %v2008_v9  ;;  %v2010_v11 = vld [vmem:[%s2687_s3 + $0x8] sm:$0xff]   ;;  %v2011_v12 = vld [vmem:[%s2687_s3] sm:$0xff]  }
  0x19   :  { %2003 = vset.pattern.permute.xlu1 %v2106_v6  ;;  %177 = vst.msk [vmem:[#allocation2 + $0x19] sm:$0xff] %vm171_vm0, %v2108_v8  ;;  %179 = vst.msk [vmem:[#allocation2 + $0x41] sm:$0xff] %vm171_vm0, %v2108_v8  ;;  %1862 = vmatpush3.bf16.msra.mxu0 %v2008_v9  ;;  %v1660_v21 = vld [vmem:[%s2685_s1] ss:$0 sm:$0xff]  ;;  %v1661_v27 = vld [vmem:[%s2685_s1 + $0x1] ss:$0 sm:$0xff] }
  0x1a   :  { %119 = vperm.xlu1 %2003, %v44_v0   ;;  %178 = vst.msk [vmem:[#allocation2 + $0x21] sm:$0x1] %vm173_vm1, %v2108_v8  ;;  %180 = vst.msk [vmem:[#allocation2 + $0x49] sm:$0x1] %vm173_vm1, %v2108_v8  ;;  %1863 = vmatprep.subr.bf16.mxu0 %v2009_v10  ;;  %v1659_v26 = vld [vmem:[%s2691_s7] ss:$0 sm:$0xff] }
  0x1b   :  { %v1662_v29 = vld [vmem:[%s2685_s1 + $0x2] ss:$0 sm:$0xff]  ;;  %v1663_v39 = vld [vmem:[%s2685_s1 + $0x3] ss:$0 sm:$0xff]  ;;  %v1664_v58 = vld [vmem:[%s2686_s2] ss:$0 sm:$0xff] }
  0x1c   :  { %2005 = vset.pattern.permute.xlu0 %v2107_v7  ;;  %v1665_v60 = vld [vmem:[%s2686_s2 + $0x1] ss:$0 sm:$0xff]  ;;  %vm1013_vm4 = vcmask 261120   ;;  %vm1138_vm5 = vcmask 517120  }
  0x1d   :  { %148 = vperm.xlu0 %2005, %v44_v0   ;;  %1864 = vmatpush3.bf16.msra.mxu0 %v2009_v10  ;;  %v1666_v10 = vld [vmem:[%s2686_s2 + $0x2] ss:$0 sm:$0xff] }
  0x1e   :  { %2004 = vset.pattern.permute.xlu1 %v2107_v7  ;;  %1865 = vmatprep.subr.bf16.mxu0 %v2010_v11  ;;  %v185_v56 = vld [vmem:[#allocation2] sm:$0xff]  ;;  %v187_v5 = vld [vmem:[#allocation2 + $0x28] sm:$0xff] }
  0x1f   :  { %144 = vperm.xlu1 %2004, %v43_v1   ;;  %v198_v59 = vld [vmem:[#allocation2 + $0x1] sm:$0xff]  ;;  %v200_v6 = vld [vmem:[#allocation2 + $0x29] sm:$0xff] }
  0x21   :  { %2006 = vset.pattern.permute.xlu0 %v2104_v2  ;;  %1866 = vmatpush3.bf16.msra.mxu0 %v2010_v11 }
  0x22   :  { %1867 = vmatprep.subr.bf16.mxu0 %v2011_v12 }
  0x23   :  { %152 = vperm.xlu1 %2004, %v45_v3   ;;  %v207_v3 = vmul.f32 %v1665_v60, %v198_v59 }
  0x25   :  { %1868 = vmatpush3.bf16.msra.mxu0 %v2011_v12  ;;  %v196_v12 = vmul.f32 %v1664_v58, %v187_v5 }
  0x27   :  { %156 = vperm.xlu1 %2004, %v46_v4  }
  0x2b   :  { %2007 = vset.pattern.permute.xlu1 %v2104_v2  ;;  %v194_v2 = vmul.f32 %v1664_v58, %v185_v56 }
  0x7d   :  { %v60_v13 = vpop.permute.xlu1 %59  ;;  %v55_v14 = vpop.permute.xlu0 %54 }
  0x7e   :  { %v77_v23 = vmul.f32 %v1660_v21, %v60_v13  ;;  %v76_v24 = vmul.f32 %v1660_v21, %v55_v14  ;;  %v209_v13 = vmul.f32 %v1665_v60, %v200_v6  ;;  %v211_v14 = vadd.f32 %v207_v3, %v194_v2 }
  0x80   :  { %v81_v31 = vadd.f32 %v1659_v26, %v77_v23  ;;  %v80_v32 = vadd.f32 %v1659_v26, %v76_v24 }
  0x81   :  { %v65_v15 = vpop.permute.xlu0 %64 }
  0x82   :  { %v87_v16 = vpop.permute.xlu1 %86  ;;  %v78_v34 = vmul.f32 %v1660_v21, %v65_v15  ;;  %v1667_v15 = vld [vmem:[%s2686_s2 + $0x3] ss:$0 sm:$0xff] }
  0x83   :  { %v105_v33 = vmul.f32 %v1661_v27, %v87_v16 }
  0x84   :  { %v82_v43 = vadd.f32 %v1659_v26, %v78_v34 }
  0x85   :  { %v70_v17 = vpop.permute.xlu0 %69  ;;  %v109_v40 = vadd.f32 %v105_v33, %v80_v32 }
  0x86   :  { %v95_v18 = vpop.permute.xlu1 %94  ;;  %v79_v45 = vmul.f32 %v1660_v21, %v70_v17 }
  0x87   :  { %v107_v44 = vmul.f32 %v1661_v27, %v95_v18 }
  0x88   :  { %v83_v54 = vadd.f32 %v1659_v26, %v79_v45  ;;  %v213_v26 = vadd.f32 %v209_v13, %v196_v12 }
  0x89   :  { %v111_v53 = vadd.f32 %v107_v44, %v82_v43 }
  0x8a   :  { %v91_v19 = vpop.permute.xlu0 %90 }
  0x8b   :  { %v116_v20 = vpop.permute.xlu1 %115  ;;  %v106_v28 = vmul.f32 %v1661_v27, %v91_v19 }
  0x8c   :  { %v134_v37 = vmul.f32 %v1662_v29, %v116_v20 }
  0x8d   :  { %v110_v36 = vadd.f32 %v106_v28, %v81_v31  ;;  %v2259_v31 = vld [vmem:[%s2686_s2 + $0x5] ss:$0 sm:$0xff] }
  0x8e   :  { %v138_v47 = vadd.f32 %v134_v37, %v109_v40 }
  0x8f   :  { %v124_v22 = vpop.permute.xlu0 %123 }
  0x90   :  { %v99_v25 = vpop.permute.xlu1 %98  ;;  %v136_v49 = vmul.f32 %v1662_v29, %v124_v22 }
  0x91   :  { %v108_v50 = vmul.f32 %v1661_v27, %v99_v25 }
  0x92   :  { %v140_v61 = vadd.f32 %v136_v49, %v111_v53  ;;  %v2275_v53 = vld [vmem:[%s2686_s2 + $0x6] ss:$0 sm:$0xff] }
  0x93   :  { %v128_v30 = vpop.permute.xlu0 %127  ;;  %v112_v62 = vadd.f32 %v108_v50, %v83_v54 }
  0x94   :  { %v137_v63 = vmul.f32 %v1662_v29, %v128_v30  ;;  %v1668_v30 = vld [vmem:[%s2686_s2 + $0x4] ss:$0 sm:$0xff] }
  0x95   :  { %v120_v35 = vpop.permute.xlu1 %119 }
  0x96   :  { %v135_v38 = vmul.f32 %v1662_v29, %v120_v35  ;;  %v141_v7 = vadd.f32 %v137_v63, %v112_v62 }
  0x98   :  { %v139_v41 = vadd.f32 %v135_v38, %v110_v36  ;;  %v149_v42 = vpop.permute.xlu0 %148 }
  0x99   :  { %v164_v46 = vmul.f32 %v1663_v39, %v149_v42 }
  0x9a   :  { %v145_v48 = vpop.permute.xlu1 %144 }
  0x9b   :  { %v2214_v51 = vadd.f32 %v164_v46, %v139_v41  ;;  %v163_v52 = vmul.f32 %v1663_v39, %v145_v48 }
  0x9d   :  { %182 = vst.msk [vmem:[#allocation2 + $0x11] sm:$0xff] %vm171_vm0, %v2214_v51  ;;  %v2218_v55 = vadd.f32 %v163_v52, %v138_v47 }
  0x9e   :  { %v153_v57 = vpop.permute.xlu1 %152 }
  0x9f   :  { %181 = vst.msk [vmem:[#allocation2 + $0x9] sm:$0xff] %vm171_vm0, %v2218_v55  ;;  %v165_v0 = vmul.f32 %v1663_v39, %v153_v57 }
  0xa1   :  { %v2228_v1 = vadd.f32 %v165_v0, %v140_v61 }
  0xa2   :  { %v157_v4 = vpop.permute.xlu1 %156 }
  0xa3   :  { %183 = vst.msk [vmem:[#allocation2 + $0x31] sm:$0xff] %vm171_vm0, %v2228_v1  ;;  %v166_v9 = vmul.f32 %v1663_v39, %v157_v4  ;;  %v2289_v4 = vld [vmem:[%s2686_s2 + $0x7] ss:$0 sm:$0xff] }
  0xa5   :  { %v2235_v11 = vadd.f32 %v166_v9, %v141_v7 }
  0xa6   :  { %v2240_v16 = vld [vmem:[#allocation2 + $0x8] sm:$0xff] }
  0xa7   :  { %v2242_v17 = vld [vmem:[#allocation2 + $0x9] sm:$0xff]  ;;  %184 = vst.msk [vmem:[#allocation2 + $0x39] sm:$0xff] %vm171_vm0, %v2235_v11  ;;  %v195_v19 = vmul.f32 %v1664_v58, %v2240_v16 }
  0xa8   :  { %v215_v18 = vld [vmem:[#allocation2 + $0x2] sm:$0xff]  ;;  %v208_v20 = vmul.f32 %v1665_v60, %v2242_v17  ;;  %v2248_v21 = vld [vmem:[#allocation2 + $0xa] sm:$0xff] }
  0xa9   :  { %v224_v22 = vmul.f32 %v1666_v10, %v215_v18  ;;  %v232_v23 = vld [vmem:[#allocation2 + $0x3] sm:$0xff]  ;;  %v2250_v24 = vld [vmem:[#allocation2 + $0xb] sm:$0xff]  ;;  %v225_v27 = vmul.f32 %v1666_v10, %v2248_v21 }
  0xaa   :  { %v212_v25 = vadd.f32 %v208_v20, %v195_v19  ;;  %v249_v29 = vld [vmem:[#allocation2 + $0x4] sm:$0xff]  ;;  %v2261_v32 = vld [vmem:[#allocation2 + $0x30] sm:$0xff]  ;;  %v241_v35 = vmul.f32 %v1667_v15, %v232_v23  ;;  %v242_v36 = vmul.f32 %v1667_v15, %v2250_v24 }
  0xab   :  { %v228_v28 = vadd.f32 %v224_v22, %v211_v14  ;;  %v2263_v33 = vld [vmem:[#allocation2 + $0x31] sm:$0xff]  ;;  %v197_v37 = vmul.f32 %v1664_v58, %v2261_v32  ;;  %v266_v43 = vld [vmem:[#allocation2 + $0x5] sm:$0xff]  ;;  %v258_v46 = vmul.f32 %v1668_v30, %v249_v29 }
  0xac   :  { %v217_v34 = vld [vmem:[#allocation2 + $0x2a] sm:$0xff]  ;;  %v210_v38 = vmul.f32 %v1665_v60, %v2263_v33  ;;  %v229_v40 = vadd.f32 %v225_v27, %v212_v25  ;;  %v275_v60 = vmul.f32 %v2259_v31, %v266_v43  ;;  %v2303_v22 = vld [vmem:[%s2686_s2 + $0x8] ss:$0 sm:$0xff] }
  0xad   :  { %v226_v39 = vmul.f32 %v1666_v10, %v217_v34  ;;  %v234_v41 = vld [vmem:[#allocation2 + $0x2b] sm:$0xff]  ;;  %v245_v44 = vadd.f32 %v241_v35, %v228_v28 }
  0xae   :  { %v2268_v42 = vld [vmem:[#allocation2 + $0xc] sm:$0xff]  ;;  %v243_v48 = vmul.f32 %v1667_v15, %v234_v41  ;;  %v246_v49 = vadd.f32 %v242_v36, %v229_v40  ;;  %v214_v61 = vadd.f32 %v210_v38, %v197_v37  ;;  %v2291_v5 = vld [vmem:[#allocation2 + $0x34] sm:$0xff]  ;;  %v324_v40 = vmul.f32 %v2303_v22, %v2240_v16 }
  0xaf   :  { %v251_v45 = vld [vmem:[#allocation2 + $0x2c] sm:$0xff]  ;;  %v230_v47 = vadd.f32 %v226_v39, %v213_v26  ;;  %v259_v57 = vmul.f32 %v1668_v30, %v2268_v42  ;;  %v262_v58 = vadd.f32 %v258_v46, %v245_v44  ;;  %v452_v41 = vld [vmem:[#allocation2 + $0x19] sm:$0xff] }
  0xb0   :  { %v2270_v50 = vld [vmem:[#allocation2 + $0xd] sm:$0xff]  ;;  %v260_v0 = vmul.f32 %v1668_v30, %v251_v45  ;;  %v2316_v43 = vld [vmem:[#allocation2 + $0x35] sm:$0xff] }
  0xb1   :  { %v283_v52 = vld [vmem:[#allocation2 + $0x6] sm:$0xff]  ;;  %v2277_v54 = vld [vmem:[#allocation2 + $0x32] sm:$0xff]  ;;  %v247_v63 = vadd.f32 %v243_v48, %v230_v47  ;;  %v263_v6 = vadd.f32 %v259_v57, %v246_v49  ;;  %v276_v7 = vmul.f32 %v2259_v31, %v2270_v50  ;;  %v279_v9 = vadd.f32 %v275_v60, %v262_v58  ;;  %v2330_v57 = vld [vmem:[%s2686_s2 + $0x11] ss:$0 sm:$0xff] }
  0xb2   :  { %v2279_v56 = vld [vmem:[#allocation2 + $0x33] sm:$0xff]  ;;  %v227_v62 = vmul.f32 %v1666_v10, %v2277_v54  ;;  %v300_v3 = vld [vmem:[#allocation2 + $0x7] sm:$0xff]  ;;  %v292_v10 = vmul.f32 %v2275_v53, %v283_v52  ;;  %v326_v60 = vmul.f32 %v2303_v22, %v2261_v32 }
  0xb3   :  { %v268_v59 = vld [vmem:[#allocation2 + $0x2d] sm:$0xff]  ;;  %v244_v14 = vmul.f32 %v1667_v15, %v2279_v56  ;;  %v264_v18 = vadd.f32 %v260_v0, %v247_v63  ;;  %v280_v23 = vadd.f32 %v276_v7, %v263_v6  ;;  %v309_v28 = vmul.f32 %v2289_v4, %v300_v3  ;;  %v1673_v47 = vld [vmem:[%s2686_s2 + $0x9] ss:$0 sm:$0xff]  ;;  %v2332_v58 = vld [vmem:[#allocation2 + $0x36] sm:$0xff] }
  0xb4   :  { %v2284_v2 = vld [vmem:[#allocation2 + $0xe] sm:$0xff]  ;;  %v231_v13 = vadd.f32 %v227_v62, %v214_v61  ;;  %v277_v19 = vmul.f32 %v2259_v31, %v268_v59  ;;  %v296_v26 = vadd.f32 %v292_v10, %v279_v9  ;;  %v261_v15 = vmul.f32 %v1668_v30, %v2291_v5  ;;  %v1674_v62 = vld [vmem:[%s2686_s2 + $0xa] ss:$0 sm:$0xff]  ;;  %v2348_v9 = vld [vmem:[#allocation2 + $0x37] sm:$0xff] }
  0xb5   :  { %v285_v12 = vld [vmem:[#allocation2 + $0x2e] sm:$0xff]  ;;  %v293_v25 = vmul.f32 %v2275_v53, %v2284_v2  ;;  %v339_v16 = vmul.f32 %v1673_v47, %v2242_v17  ;;  %v2342_v63 = vmul.f32 %v2330_v57, %v452_v41  ;;  %v278_v17 = vmul.f32 %v2259_v31, %v2316_v43 }
  0xb6   :  { %v2298_v20 = vld [vmem:[#allocation2 + $0xf] sm:$0xff]  ;;  %v248_v29 = vadd.f32 %v244_v14, %v231_v13  ;;  %v281_v34 = vadd.f32 %v277_v19, %v264_v18  ;;  %v294_v35 = vmul.f32 %v2275_v53, %v285_v12  ;;  %v313_v39 = vadd.f32 %v309_v28, %v296_v26  ;;  %v1675_v13 = vld [vmem:[%s2686_s2 + $0xb] ss:$0 sm:$0xff]  ;;  %v1676_v28 = vld [vmem:[%s2686_s2 + $0xc] ss:$0 sm:$0xff] }
  0xb7   :  { %v302_v27 = vld [vmem:[#allocation2 + $0x2f] sm:$0xff]  ;;  %v297_v37 = vadd.f32 %v293_v25, %v280_v23  ;;  %v310_v38 = vmul.f32 %v2289_v4, %v2298_v20  ;;  %v354_v7 = vmul.f32 %v1674_v62, %v2248_v21  ;;  %v341_v12 = vmul.f32 %v1673_v47, %v2263_v33  ;;  %v2358_v25 = vld [vmem:[#allocation2 + $0x38] sm:$0xff] }
  0xb8   :  { %v2310_v36 = vld [vmem:[#allocation2 + $0x10] sm:$0xff]  ;;  %v265_v44 = vadd.f32 %v261_v15, %v248_v29  ;;  %v298_v45 = vadd.f32 %v294_v35, %v281_v34  ;;  %v311_v30 = vmul.f32 %v2289_v4, %v302_v27  ;;  %v328_v52 = vadd.f32 %v324_v40, %v313_v39  ;;  %v1677_v40 = vld [vmem:[%s2686_s2 + $0xd] ss:$0 sm:$0xff] }
  0xb9   :  { %v2319_v46 = vld [vmem:[#allocation2 + $0x11] sm:$0xff]  ;;  %v314_v48 = vadd.f32 %v310_v38, %v297_v37  ;;  %v325_v49 = vmul.f32 %v2303_v22, %v2310_v36  ;;  %v295_v31 = vmul.f32 %v2275_v53, %v2332_v58  ;;  %v369_v21 = vmul.f32 %v1675_v13, %v2250_v24  ;;  %v2367_v24 = vld [vmem:[#allocation2 + $0x39] sm:$0xff] }
  0xba   :  { %v315_v59 = vadd.f32 %v311_v30, %v298_v45  ;;  %v2336_v61 = vld [vmem:[#allocation2 + $0x12] sm:$0xff]  ;;  %v340_v3 = vmul.f32 %v1673_v47, %v2319_v46  ;;  %v343_v6 = vadd.f32 %v339_v16, %v328_v52  ;;  %v282_v14 = vadd.f32 %v278_v17, %v265_v44 }
  0xbb   :  { %v329_v0 = vadd.f32 %v325_v49, %v314_v48  ;;  %v362_v10 = vld [vmem:[#allocation2 + $0x13] sm:$0xff]  ;;  %v355_v19 = vmul.f32 %v1674_v62, %v2336_v61  ;;  %v356_v33 = vmul.f32 %v1674_v62, %v2277_v54  ;;  %v312_v53 = vmul.f32 %v2289_v4, %v2348_v9 }
  0xbc   :  { %v330_v32 = vadd.f32 %v326_v60, %v315_v59  ;;  %v358_v23 = vadd.f32 %v354_v7, %v343_v6  ;;  %v377_v27 = vld [vmem:[#allocation2 + $0x14] sm:$0xff]  ;;  %v299_v29 = vadd.f32 %v295_v31, %v282_v14  ;;  %v370_v34 = vmul.f32 %v1675_v13, %v362_v10  ;;  %v1679_v7 = vld [vmem:[%s2686_s2 + $0xf] ss:$0 sm:$0xff] }
  0xbd   :  { %v344_v18 = vadd.f32 %v340_v3, %v329_v0  ;;  %v384_v37 = vmul.f32 %v1676_v28, %v2268_v42  ;;  %v371_v39 = vmul.f32 %v1675_v13, %v2279_v56  ;;  %v392_v54 = vld [vmem:[#allocation2 + $0x15] sm:$0xff]  ;;  %v327_v44 = vmul.f32 %v2303_v22, %v2358_v25  ;;  %v1678_v56 = vld [vmem:[%s2686_s2 + $0xe] ss:$0 sm:$0xff] }
  0xbe   :  { %v345_v26 = vadd.f32 %v341_v12, %v330_v32  ;;  %v373_v35 = vadd.f32 %v369_v21, %v358_v23  ;;  %v316_v41 = vadd.f32 %v312_v53, %v299_v29  ;;  %v385_v45 = vmul.f32 %v1676_v28, %v377_v27  ;;  %v2376_v42 = vld [vmem:[#allocation2 + $0x3a] sm:$0xff] }
  0xbf   :  { %v359_v15 = vadd.f32 %v355_v19, %v344_v18  ;;  %v399_v48 = vmul.f32 %v1677_v40, %v2270_v50  ;;  %v407_v52 = vld [vmem:[#allocation2 + $0x16] sm:$0xff]  ;;  %v342_v59 = vmul.f32 %v1673_v47, %v2367_v24  ;;  %v386_v60 = vmul.f32 %v1676_v28, %v2291_v5 }
  0xc0   :  { %v360_v38 = vadd.f32 %v356_v33, %v345_v26  ;;  %v388_v30 = vadd.f32 %v384_v37, %v373_v35  ;;  %v331_v16 = vadd.f32 %v327_v44, %v316_v41  ;;  %v400_v22 = vmul.f32 %v1677_v40, %v392_v54  ;;  %v363_v6 = vld [vmem:[#allocation2 + $0x3b] sm:$0xff] }
  0xc1   :  { %v374_v4 = vadd.f32 %v370_v34, %v359_v15  ;;  %v414_v3 = vmul.f32 %v1678_v56, %v2284_v2  ;;  %v422_v50 = vld [vmem:[#allocation2 + $0x17] sm:$0xff]  ;;  %v357_v12 = vmul.f32 %v1674_v62, %v2376_v42  ;;  %v401_v14 = vmul.f32 %v1677_v40, %v2316_v43  ;;  %v1680_v2 = vld [vmem:[%s2686_s2 + $0x10] ss:$0 sm:$0xff] }
  0xc2   :  { %v375_v49 = vadd.f32 %v371_v39, %v360_v38  ;;  %v403_v0 = vadd.f32 %v399_v48, %v388_v30  ;;  %v346_v32 = vadd.f32 %v342_v59, %v331_v16  ;;  %v415_v31 = vmul.f32 %v1678_v56, %v407_v52  ;;  %v378_v19 = vld [vmem:[#allocation2 + $0x3c] sm:$0xff] }
  0xc3   :  { %v389_v17 = vadd.f32 %v385_v45, %v374_v4  ;;  %v429_v18 = vmul.f32 %v1679_v7, %v2298_v20  ;;  %v437_v23 = vld [vmem:[#allocation2 + $0x18] sm:$0xff]  ;;  %v372_v26 = vmul.f32 %v1675_v13, %v363_v6  ;;  %v416_v27 = vmul.f32 %v1678_v56, %v2332_v58  ;;  %v1682_v58 = vld [vmem:[%s2686_s2 + $0x12] ss:$0 sm:$0xff] }
  0xc4   :  { %v390_v10 = vadd.f32 %v386_v60, %v375_v49  ;;  %v418_v5 = vadd.f32 %v414_v3, %v403_v0  ;;  %v361_v21 = vadd.f32 %v357_v12, %v346_v32  ;;  %v430_v29 = vmul.f32 %v1679_v7, %v422_v50  ;;  %v393_v15 = vld [vmem:[#allocation2 + $0x3d] sm:$0xff] }
  0xc5   :  { %v404_v47 = vadd.f32 %v400_v22, %v389_v17  ;;  %v444_v43 = vmul.f32 %v1680_v2, %v2310_v36  ;;  %v467_v34 = vld [vmem:[#allocation2 + $0x1a] sm:$0xff]  ;;  %v387_v20 = vmul.f32 %v1676_v28, %v378_v19  ;;  %v431_v38 = vmul.f32 %v1679_v7, %v2348_v9  ;;  %v468_v50 = vld [vmem:[#allocation2 + $0x42] sm:$0xff] }
  0xc6   :  { %v405_v33 = vadd.f32 %v401_v14, %v390_v10  ;;  %v433_v53 = vadd.f32 %v429_v18, %v418_v5  ;;  %v376_v35 = vadd.f32 %v372_v26, %v361_v21  ;;  %v445_v54 = vmul.f32 %v1680_v2, %v437_v23  ;;  %v408_v44 = vld [vmem:[#allocation2 + $0x3e] sm:$0xff] }
  0xc7   :  { %v419_v62 = vadd.f32 %v415_v31, %v404_v47  ;;  %v459_v13 = vmul.f32 %v2330_v57, %v2319_v46  ;;  %v402_v36 = vmul.f32 %v1677_v40, %v393_v15  ;;  %v475_v28 = vmul.f32 %v1682_v58, %v467_v34  ;;  %v423_v49 = vld [vmem:[#allocation2 + $0x3f] sm:$0xff] }
  0xc8   :  { %v420_v37 = vadd.f32 %v416_v27, %v405_v33  ;;  %v448_v41 = vadd.f32 %v444_v43, %v433_v53  ;;  %v391_v4 = vadd.f32 %v387_v20, %v376_v35  ;;  %v417_v9 = vmul.f32 %v1678_v56, %v408_v44  ;;  %v438_v60 = vld [vmem:[#allocation2 + $0x40] sm:$0xff] }
  0xc9   :  { %v434_v39 = vadd.f32 %v430_v29, %v419_v62  ;;  %v446_v16 = vmul.f32 %v1680_v2, %v2358_v25  ;;  %v474_v46 = vmul.f32 %v1682_v58, %v2336_v61  ;;  %v453_v17 = vld [vmem:[#allocation2 + $0x41] sm:$0xff]  ;;  %v432_v0 = vmul.f32 %v1679_v7, %v423_v49 }
  0xca   :  { %v435_v45 = vadd.f32 %v431_v38, %v420_v37  ;;  %v463_v48 = vadd.f32 %v459_v13, %v448_v41  ;;  %v406_v52 = vadd.f32 %v402_v36, %v391_v4  ;;  %v447_v12 = vmul.f32 %v1680_v2, %v438_v60  ;;  %v2017_v60 = vld [vmem:[%s2688_s4 + $0x28] sm:$0xff]  }
  0xcb   :  { %v449_v30 = vadd.f32 %v445_v54, %v434_v39  ;;  %v461_v10 = vmul.f32 %v2330_v57, %v2367_v24  ;;  %v462_v56 = vmul.f32 %v2330_v57, %v453_v17  ;;  %v477_v47 = vmul.f32 %v1682_v58, %v468_v50  ;;  %v1689_v57 = vld [vmem:[%s2691_s7 + $0x1] ss:$0 sm:$0xff] }
  0xcc   :  { %v421_v22 = vadd.f32 %v417_v9, %v406_v52  ;;  %v450_v3 = vadd.f32 %v446_v16, %v435_v45  ;;  %v478_v6 = vadd.f32 %v474_v46, %v463_v48  ;;  %v476_v7 = vmul.f32 %v1682_v58, %v2376_v42  ;;  %v2012_v52 = vld [vmem:[%s2688_s4 + $0x18] sm:$0xff]   ;;  %v2014_v16 = vld [vmem:[%s2688_s4 + $0x10] sm:$0xff]   ;;  %v2016_v46 = vld [vmem:[%s2688_s4 + $0x8] sm:$0xff]  }
  0xcd   :  { %v464_v59 = vadd.f32 %v2342_v63, %v449_v30  ;;  %v2013_v9 = vld [vmem:[%s2688_s4 + $0x38] sm:$0xff]   ;;  %1873 = vmatprep.subr.bf16.mxu1 %v2012_v52  ;;  %v2018_v17 = vld [vmem:[%s2688_s4] sm:$0xff]  }
  0xce   :  { %v436_v32 = vadd.f32 %v432_v0, %v421_v22  ;;  %v465_v63 = vadd.f32 %v461_v10, %v450_v3  ;;  %1885 = vmatprep.subr.bf16.mxu0 %v2013_v9  ;;  %1874 = vmatpush3.bf16.msra.mxu1 %v2012_v52  ;;  %v2019_v22 = vld [vmem:[%s2688_s4 + $0x20] sm:$0xff]  }
  0xcf   :  { %v479_v40 = vadd.f32 %v475_v28, %v464_v59  ;;  %v2015_v59 = vld [vmem:[%s2688_s4 + $0x30] sm:$0xff]   ;;  %1875 = vmatprep.subr.bf16.mxu1 %v2014_v16 }
  0xd0   :  { %v451_v14 = vadd.f32 %v447_v12, %v436_v32  ;;  %v480_v31 = vadd.f32 %v476_v7, %v465_v63  ;;  %v1690_v7 = vld [vmem:[%s2691_s7 + $0x2] ss:$0 sm:$0xff] }
  0xd1   :  { %v482_v25 = vpack.c.bf16 %v479_v40, %v478_v6 }
  0xd2   :  { %v466_v61 = vadd.f32 %v462_v56, %v451_v14  ;;  %1876 = vmatpush3.bf16.msra.mxu1 %v2014_v16 }
  0xd3   :  { %1869 = vmatprep.mubr.msk.bf16.mxu0 %vm171_vm0, %v482_v25  ;;  %1877 = vmatprep.subr.bf16.mxu1 %v2016_v46 }
  0xd4   :  { %v481_v5 = vadd.f32 %v477_v47, %v466_v61 }
  0xd6   :  { %v483_v18 = vpack.c.bf16 %v481_v5, %v480_v31  ;;  %1878 = vmatpush3.bf16.msra.mxu1 %v2016_v46 }
  0xd7   :  { %1879 = vmatprep.subr.bf16.mxu1 %v2018_v17 }
  0xd8   :  { %1870 = vmatmul.mubr.msk.bf16.vlgmr.msra.gmra.mxu0 %vm171_vm0, %v483_v18 }
  0xd9   :  { %1886 = vmatpush3.bf16.msra.mxu0 %v2013_v9 }
  0xda   :  { %1887 = vmatprep.subr.bf16.mxu0 %v2015_v59  ;;  %1880 = vmatpush3.bf16.msra.mxu1 %v2018_v17 }
  0xdd   :  { %1888 = vmatpush3.bf16.msra.mxu0 %v2015_v59 }
  0xde   :  { %1889 = vmatprep.subr.bf16.mxu0 %v2017_v60 }
  0xe1   :  { %1890 = vmatpush3.bf16.msra.mxu0 %v2017_v60 }
  0xe2   :  { %1891 = vmatprep.subr.bf16.mxu0 %v2019_v22 }
  0xe5   :  { %1892 = vmatpush3.bf16.msra.mxu0 %v2019_v22 }
  0xe6   :  { %1909 = vmatprep.subr.bf16.mxu0 %v2108_v8 }
 0x198   :  { %v1871_v19 = vpop.f32.mrf.mxu0 }
 0x199   :  { %v573_v42 = vadd.f32 %v1871_v19, %v2228_v1  ;;  %v1691_v19 = vld [vmem:[%s2691_s7 + $0x3] ss:$0 sm:$0xff] }
 0x19a   :  { %v556_v23 = vpop.f32.mrf.mxu0 }
 0x19b   :  { %v571_v24 = vadd.f32 %v556_v23, %v2218_v55  ;;  %v581_v15 = vadd.f32 %v1689_v57, %v573_v42 }
 0x19c   :  { %v1872_v2 = vpop.f32.mrf.mxu0 }
 0x19d   :  { %v574_v21 = vadd.f32 %v1872_v2, %v2235_v11  ;;  %v579_v26 = vadd.f32 %v1689_v57, %v571_v24  ;;  %v589_v11 = vsel %vm171_vm0, %v581_v15, 0.0 }
 0x19e   :  { %v559_v33 = vpop.f32.mrf.mxu0 }
 0x19f   :  { %v572_v27 = vadd.f32 %v559_v33, %v2214_v51  ;;  %v583_v62 = vsel %vm171_vm0, %v579_v26, 0.0  ;;  %v582_v29 = vadd.f32 %v1689_v57, %v574_v21 }
 0x1a0   :  { %584 = vadd.xlane.f32.xlu1 %v583_v62 }
 0x1a1   :  { %v580_v53 = vadd.f32 %v1689_v57, %v572_v27  ;;  %v592_v55 = vsel %vm171_vm0, %v582_v29, 0.0 }
 0x1a3   :  { %v586_v43 = vsel %vm171_vm0, %v580_v53, 0.0 }
 0x1a4   :  { %593 = vadd.xlane.f32.xlu1 %v592_v55  ;;  %587 = vadd.xlane.f32.xlu0 %v586_v43  ;;  %v2478_v43 = vld [vmem:[%s2689_s5] sm:$0xff]  }
 0x1a8   :  { %590 = vadd.xlane.f32.xlu0 %v589_v11 }
 0x229   :  { %v585_v34 = vpop.xlane.xlu1 %584 }
 0x22a   :  { %v596_v35 = vmul.f32 0.015625, %v585_v34 }
 0x22c   :  { %v2421_v1 = vsub.f32 %v579_v26, %v596_v35 }
 0x22d   :  { %v594_v51 = vpop.xlane.xlu1 %593  ;;  %v588_v20 = vpop.xlane.xlu0 %587 }
 0x22e   :  { %v599_v37 = vmul.f32 0.015625, %v594_v51  ;;  %v597_v38 = vmul.f32 0.015625, %v588_v20  ;;  %v604_v39 = vmul.f32 %v2421_v1, %v2421_v1 }
 0x230   :  { %v2425_v54 = vsub.f32 %v582_v29, %v599_v37  ;;  %v601_v41 = vsub.f32 %v580_v53, %v597_v38  ;;  %v608_v13 = vsel %vm171_vm0, %v604_v39, 0.0 }
 0x231   :  { %609 = vadd.xlane.f32.xlu0 %v608_v13  ;;  %v591_v44 = vpop.xlane.xlu0 %590 }
 0x232   :  { %v598_v58 = vmul.f32 0.015625, %v591_v44  ;;  %v605_v4 = vmul.f32 %v601_v41, %v601_v41  ;;  %v607_v30 = vmul.f32 %v2425_v54, %v2425_v54  ;;  %v2491_v44 = vld [vmem:[%s2689_s5 + $0x8] sm:$0xff]  }
 0x234   :  { %v2428_v36 = vsub.f32 %v581_v15, %v598_v58  ;;  %v611_v45 = vsel %vm171_vm0, %v605_v4, 0.0  ;;  %v617_v28 = vsel %vm171_vm0, %v607_v30, 0.0 }
 0x235   :  { %612 = vadd.xlane.f32.xlu1 %v611_v45 }
 0x236   :  { %v606_v48 = vmul.f32 %v2428_v36, %v2428_v36 }
 0x238   :  { %v614_v49 = vsel %vm171_vm0, %v606_v48, 0.0 }
 0x239   :  { %618 = vadd.xlane.f32.xlu1 %v617_v28  ;;  %615 = vadd.xlane.f32.xlu0 %v614_v49 }
 0x2ba   :  { %v610_v0 = vpop.xlane.xlu0 %609 }
 0x2bb   :  { %v620_v3 = vmul.f32 0.015625, %v610_v0 }
 0x2bd   :  { %v624_v6 = vadd.f32 1e-05, %v620_v3 }
 0x2be   :  { %v613_v40 = vpop.xlane.xlu1 %612 }
 0x2bf   :  { %2038 = vrsqrt.f32 %v624_v6  ;;  %v621_v50 = vmul.f32 0.015625, %v613_v40 }
 0x2c1   :  { %v625_v32 = vadd.f32 1e-05, %v621_v50 }
 0x2c2   :  { %v619_v12 = vpop.xlane.xlu1 %618  ;;  %v616_v10 = vpop.xlane.xlu0 %615 }
 0x2c3   :  { %2040 = vrsqrt.f32 %v625_v32  ;;  %v623_v56 = vmul.f32 0.015625, %v619_v12  ;;  %v622_v25 = vmul.f32 0.015625, %v616_v10 }
 0x2c5   :  { %v627_v14 = vadd.f32 1e-05, %v623_v56  ;;  %v626_v63 = vadd.f32 1e-05, %v622_v25 }
 0x2c7   :  { %2042 = vrsqrt.f32 %v627_v14 }
 0x2c8   :  { %2044 = vrsqrt.f32 %v626_v63 }
 0x2cc   :  { %v2039_v47 = vpop.eup %2038 }
 0x2cd   :  { %v632_v61 = vmul.f32 %v2039_v47, %v2421_v1 }
 0x2cf   :  { %v640_v18 = vmul.f32 %v1690_v7, %v632_v61 }
 0x2d0   :  { %v2041_v31 = vpop.eup %2040 }
 0x2d1   :  { %v633_v5 = vmul.f32 %v2041_v31, %v601_v41  ;;  %v648_v57 = vadd.f32 %v1691_v19, %v640_v18  ;;  %v2022_v18 = vld [vmem:[%s2687_s3 + $0x38] sm:$0xff]  }
 0x2d3   :  { %v641_v23 = vmul.f32 %v1690_v7, %v633_v5 }
 0x2d4   :  { %v2043_v24 = vpop.eup %2042 }
 0x2d5   :  { %v2045_v2 = vpop.eup %2044  ;;  %v649_v21 = vadd.f32 %v1691_v19, %v641_v23  ;;  %v635_v26 = vmul.f32 %v2043_v24, %v2425_v54  ;;  %v2023_v23 = vld [vmem:[%s2687_s3 + $0x30] sm:$0xff]   ;;  %v2024_v24 = vld [vmem:[%s2687_s3 + $0x28] sm:$0xff]  }
 0x2d6   :  { %v634_v33 = vmul.f32 %v2045_v2, %v2428_v36  ;;  %v2025_v2 = vld [vmem:[%s2687_s3 + $0x20] sm:$0xff]  }
 0x2d7   :  { %v652_v42 = vpack.c.bf16 %v649_v21, %v648_v57  ;;  %v643_v27 = vmul.f32 %v1690_v7, %v635_v26  ;;  %v2526_v57 = vld [vmem:[%s2689_s5 + $0x18] sm:$0xff]  }
 0x2d8   :  { %v642_v62 = vmul.f32 %v1690_v7, %v634_v33  ;;  %v1801_v26 = vunpack.c.l.bf16 %v2526_v57  ;;  %v1802_v33 = vunpack.c.h.bf16 %v2526_v57  ;;  %v2033_v57 = vld [vmem:[%s2687_s3 + $0x20] sm:$0xff]  }
 0x2d9   :  { %1881 = vmatprep.mubr.msk.bf16.mxu1 %vm171_vm0, %v652_v42  ;;  %1893 = vmatprep.mubr.msk.bf16.mxu0 %vm171_vm0, %v652_v42  ;;  %v651_v29 = vadd.f32 %v1691_v19, %v643_v27  ;;  %v2533_v42 = vld [vmem:[%s2689_s5 + $0x10] sm:$0xff]  }
 0x2da   :  { %v650_v53 = vadd.f32 %v1691_v19, %v642_v62  ;;  %v1798_v62 = vunpack.c.h.bf16 %v2533_v42 }
 0x2dc   :  { %v653_v55 = vpack.c.bf16 %v651_v29, %v650_v53 }
 0x2de   :  { %1882 = vmatmul.mubr.msk.bf16.vlgmr.msra.gmra.mxu1 %vm171_vm0, %v653_v55  ;;  %1894 = vmatmul.mubr.msk.bf16.vlgmr.msra.gmra.mxu0 %vm171_vm0, %v653_v55  ;;  %v1797_v55 = vunpack.c.l.bf16 %v2533_v42 }
 0x2df   :  { %1899 = vmatprep.mubr.msk.bf16.mxu1 %vm171_vm0, %v2478_v43  ;;  %1913 = vmatprep.mubr.msk.bf16.mxu0 %vm2109_vm3, %v2108_v8 }
 0x39e   :  { %v1883_v15 = vpop.f32.mrf.mxu1  ;;  %v1895_v11 = vpop.f32.mrf.mxu0 }
 0x3a0   :  { %v726_v34 = vpop.f32.mrf.mxu1  ;;  %v808_v35 = vpop.f32.mrf.mxu0 }
 0x3a2   :  { %v1884_v1 = vpop.f32.mrf.mxu1  ;;  %v1896_v51 = vpop.f32.mrf.mxu0 }
 0x3a3   :  { %v2482_v20 = vpack.c.bf16 %v1884_v1, %v1883_v15  ;;  %v2484_v37 = vpack.c.bf16 %v1896_v51, %v1895_v11 }
 0x3a4   :  { %v729_v38 = vpop.f32.mrf.mxu1  ;;  %v811_v39 = vpop.f32.mrf.mxu0 }
 0x3a5   :  { %v823_v54 = vpack.c.bf16 %v729_v38, %v726_v34  ;;  %v825_v13 = vpack.c.bf16 %v811_v39, %v808_v35  ;;  %v2549_v38 = vld [vmem:[%s2690_s6] sm:$0x1]  ;;  %v2026_v39 = vld [vmem:[%s2687_s3 + $0x58] sm:$0xff]  }
 0x3a7   :  { %v858_v41 = vsel %vm171_vm0, %v823_v54, 0  ;;  %1985 = vmatprep.subr.msk.bf16.mxu1 %vm171_vm0, %v823_v54  ;;  %v2027_v54 = vld [vmem:[%s2687_s3 + $0x50] sm:$0xff]  }
 0x3a8   :  { %1898 = vmatpush3.bf16.xpose.msra.mxu1 %v858_v41  ;;  %v2028_v41 = vld [vmem:[%s2687_s3 + $0x48] sm:$0xff]  }
 0x3a9   :  { %1903 = vmatprep.subr.bf16.mxu1 %v825_v13 }
 0x3af   :  { %1900 = vmatmul.mubr.msk.bf16.vlgmr.msra.gmra.mxu1 %vm171_vm0, %v2491_v44 }
 0x3b0   :  { %1904 = vmatpush3.bf16.msra.mxu1 %v825_v13  ;;  %v2029_v13 = vld [vmem:[%s2687_s3 + $0x40] sm:$0xff]  }
 0x3b1   :  { %1917 = vmatprep.subr.bf16.mxu1 %v2108_v8 }
 0x46f   :  { %v1901_v58 = vpop.f32.mrf.mxu1 }
 0x470   :  { %v911_v4 = vmul.f32 0.5, %v1901_v58 }
 0x471   :  { %v894_v36 = vpop.f32.mrf.mxu1 }
 0x472   :  { %v915_v45 = vadd.f32 -2.7725887, %v911_v4  ;;  %v909_v30 = vmul.f32 0.5, %v894_v36 }
 0x473   :  { %v1902_v48 = vpop.f32.mrf.mxu1 }
 0x474   :  { %v1722_v28 = vmul.f32 -1.442695, %v915_v45  ;;  %v913_v49 = vadd.f32 -2.7725887, %v909_v30  ;;  %v912_v52 = vmul.f32 0.5, %v1902_v48  ;;  %v1264_v45 = vsel %vm171_vm0, %v2482_v20, 0 }
 0x475   :  { %v897_v9 = vpop.f32.mrf.mxu1 }
 0x476   :  { %2046 = vpow2.f32 %v1722_v28  ;;  %v1720_v16 = vmul.f32 -1.442695, %v913_v49  ;;  %v916_v59 = vadd.f32 -2.7725887, %v912_v52  ;;  %v910_v46 = vmul.f32 0.5, %v897_v9 }
 0x478   :  { %2048 = vpow2.f32 %v1720_v16  ;;  %v1723_v60 = vmul.f32 -1.442695, %v916_v59  ;;  %v914_v17 = vadd.f32 -2.7725887, %v910_v46 }
 0x47a   :  { %2050 = vpow2.f32 %v1723_v60  ;;  %v1721_v22 = vmul.f32 -1.442695, %v914_v17 }
 0x47c   :  { %2052 = vpow2.f32 %v1721_v22 }
 0x483   :  { %v2047_v0 = vpop.eup %2046 }
 0x484   :  { %v931_v3 = vadd.f32 1.0, %v2047_v0 }
 0x485   :  { %v2049_v6 = vpop.eup %2048 }
 0x486   :  { %2054 = vrcp.f32 %v931_v3  ;;  %v929_v40 = vadd.f32 1.0, %v2049_v6 }
 0x487   :  { %v2051_v50 = vpop.eup %2050 }
 0x488   :  { %2056 = vrcp.f32 %v929_v40  ;;  %v932_v32 = vadd.f32 1.0, %v2051_v50 }
 0x489   :  { %v2053_v12 = vpop.eup %2052 }
 0x48a   :  { %2058 = vrcp.f32 %v932_v32  ;;  %v930_v10 = vadd.f32 1.0, %v2053_v12 }
 0x48c   :  { %2060 = vrcp.f32 %v930_v10 }
 0x493   :  { %v2055_v56 = vpop.eup %2054 }
 0x494   :  { %v944_v25 = vsel %vm941_vm2, %v2055_v56, 0.0 }
 0x495   :  { %v2057_v14 = vpop.eup %2056  ;;  %948 = vst [vmem:[#allocation3 + $0x10] sm:$0xff] %v944_v25 }
 0x496   :  { %v942_v63 = vsel %vm941_vm2, %v2057_v14, 0.0 }
 0x497   :  { %v2059_v47 = vpop.eup %2058  ;;  %946 = vst [vmem:[#allocation3] sm:$0xff] %v942_v63 }
 0x498   :  { %v945_v61 = vsel %vm941_vm2, %v2059_v47, 0.0  ;;  %v951_v19 = vpack.c.bf16 %v2059_v47, %v2055_v56 }
 0x499   :  { %v2061_v7 = vpop.eup %2060  ;;  %949 = vst [vmem:[#allocation3 + $0x18] sm:$0xff] %v945_v61 }
 0x49a   :  { %v943_v31 = vsel %vm941_vm2, %v2061_v7, 0.0  ;;  %v950_v5 = vpack.c.bf16 %v2061_v7, %v2057_v14 }
 0x49b   :  { %947 = vst [vmem:[#allocation3 + $0x8] sm:$0xff] %v943_v31 }
 0x49c   :  { %1905 = vmatprep.mubr.msk.bf16.mxu1 %vm941_vm2, %v950_v5 }
 0x49d   :  { %1906 = vmatmul.mubr.msk.bf16.vlgmr.msra.gmra.mxu1 %vm941_vm2, %v951_v19 }
 0x49e   :  { %1918 = vmatpush3.bf16.msra.mxu1 %v2022_v18  ;;  %1925 = vmatprep.mubr.msk.bf16.mxu1 %vm2109_vm3, %v2108_v8 }
 0x49f   :  { %1919 = vmatprep.subr.bf16.mxu1 %v2108_v8 }
 0x4a2   :  { %1920 = vmatpush3.bf16.msra.mxu1 %v2023_v23 }
 0x4a3   :  { %1921 = vmatprep.subr.bf16.mxu1 %v2108_v8 }
 0x4a6   :  { %1922 = vmatpush3.bf16.msra.mxu1 %v2024_v24 }
 0x4a7   :  { %1923 = vmatprep.subr.bf16.mxu1 %v2108_v8 }
 0x4aa   :  { %1924 = vmatpush3.bf16.msra.mxu1 %v2025_v2 }
 0x4ab   :  { %1986 = vmatprep.subr.msk.bf16.mxu1 %vm171_vm0, %v2482_v20  ;;  %v2585_v20 = vld [vmem:[%s2691_s7 + $0x4] ss:$0 sm:$0xff] }
 0x55d   :  { %v1907_v21 = vpop.f32.mrf.mxu1 }
 0x55e   :  { %v1009_v53 = vmul.f32 %v1907_v21, %v1801_v26 }
 0x55f   :  { %v992_v27 = vpop.f32.mrf.mxu1 }
 0x560   :  { %v1007_v1 = vmul.f32 %v1797_v55, %v992_v27 }
 0x561   :  { %v1908_v29 = vpop.f32.mrf.mxu1 }
 0x562   :  { %v1010_v15 = vmul.f32 %v1908_v29, %v1802_v33 }
 0x563   :  { %v995_v11 = vpop.f32.mrf.mxu1 }
 0x564   :  { %v1012_v34 = vpack.c.bf16 %v1010_v15, %v1009_v53  ;;  %v1008_v35 = vmul.f32 %v1798_v62, %v995_v11 }
 0x566   :  { %1910 = vmatpush3.bf16.msra.mxu0 %v1012_v34  ;;  %v1011_v51 = vpack.c.bf16 %v1008_v35, %v1007_v1 }
 0x567   :  { %1911 = vmatprep.subr.bf16.mxu0 %v2108_v8 }
 0x56a   :  { %1912 = vmatpush3.bf16.msra.mxu0 %v1011_v51 }
 0x56b   :  { %1929 = vmatprep.subr.bf16.mxu0 %v2108_v8 }
 0x56d   :  { %1914 = vmatmul.mubr.msk.bf16.vlgmr.msra.gmra.mxu0 %vm1013_vm4, %v2549_v38 }
 0x56e   :  { %1930 = vmatpush3.bf16.msra.mxu0 %v2026_v39  ;;  %1937 = vmatprep.mubr.msk.bf16.mxu0 %vm2109_vm3, %v2108_v8 }
 0x56f   :  { %1931 = vmatprep.subr.bf16.mxu0 %v2108_v8 }
 0x572   :  { %1932 = vmatpush3.bf16.msra.mxu0 %v2027_v54 }
 0x573   :  { %1933 = vmatprep.subr.bf16.mxu0 %v2108_v8 }
 0x576   :  { %1934 = vmatpush3.bf16.msra.mxu0 %v2028_v41 }
 0x577   :  { %1935 = vmatprep.subr.bf16.mxu0 %v2108_v8 }
 0x57a   :  { %1936 = vmatpush3.bf16.msra.mxu0 %v2029_v13  ;;  %v2597_v13 = vld [vmem:[%s2691_s7 + $0x5] ss:$0 sm:$0xff] }
 0x57b   :  { %1947 = vmatprep.subr.bf16.mxu0 %v2484_v37 }
 0x62d   :  { %v1051_v58 = vpop.f32.mrf.mxu0 }
 0x62e   :  { %v1057_v4 = vpack.c.bf16 %v1051_v58, %v1051_v58 }
 0x62f   :  { %v1915_v36 = vpop.f32.mrf.mxu0 }
 0x630   :  { %1926 = vmatmul.mubr.msk.bf16.vlgmr.msra.gmra.mxu1 %vm171_vm0, %v1057_v4  ;;  %v2602_v4 = vld [vmem:[%s2691_s7 + $0x6] ss:$0 sm:$0xff] }
 0x631   :  { %1942 = vmatpush3.bf16.xpose.msra.mxu1 %v1264_v45  ;;  %v1054_v30 = vpop.f32.mrf.mxu0  ;;  %1943 = vmatprep.mubr.msk.bf16.mxu1 %vm171_vm0, %v2478_v43 }
 0x632   :  { %1953 = vmatprep.subr.bf16.mxu1 %v2108_v8 }
 0x633   :  { %v1916_v48 = vpop.f32.mrf.mxu0 }
 0x638   :  { %1944 = vmatmul.mubr.msk.bf16.vlgmr.msra.gmra.mxu1 %vm171_vm0, %v2491_v44 }
 0x639   :  { %1957 = vmatprep.mubr.msk.bf16.mxu1 %vm2109_vm3, %v2108_v8 }
 0x6f0   :  { %v1132_v28 = vpop.f32.mrf.mxu1 }
 0x6f1   :  { %v1133_v49 = vadd.f32 %v2585_v20, %v1132_v28 }
 0x6f2   :  { %v1927_v52 = vpop.f32.mrf.mxu1 }
 0x6f3   :  { %v1139_v43 = vsel %vm1138_vm5, %v1133_v49, 0.0  ;;  %v2031_v52 = vld [vmem:[%s2687_s3 + $0x30] sm:$0xff]  }
 0x6f4   :  { %1140 = vadd.xlane.f32.xlu0 %v1139_v43  ;;  %v1135_v9 = vpop.f32.mrf.mxu1 }
 0x6f6   :  { %v1928_v16 = vpop.f32.mrf.mxu1 }
 0x6f8   :  { %v1945_v59 = vpop.f32.mrf.mxu1 }
 0x6f9   :  { %v1317_v44 = vmul.f32 0.5, %v1945_v59 }
 0x6fa   :  { %v1300_v46 = vpop.f32.mrf.mxu1 }
 0x6fb   :  { %v1321_v60 = vadd.f32 -2.7725887, %v1317_v44  ;;  %v1315_v17 = vmul.f32 0.5, %v1300_v46 }
 0x6fc   :  { %v1946_v22 = vpop.f32.mrf.mxu1 }
 0x6fd   :  { %v1763_v0 = vmul.f32 -1.442695, %v1321_v60  ;;  %v1319_v3 = vadd.f32 -2.7725887, %v1315_v17  ;;  %v1318_v6 = vmul.f32 0.5, %v1946_v22 }
 0x6fe   :  { %v1303_v40 = vpop.f32.mrf.mxu1 }
 0x6ff   :  { %2062 = vpow2.f32 %v1763_v0  ;;  %v1761_v50 = vmul.f32 -1.442695, %v1319_v3  ;;  %v1322_v32 = vadd.f32 -2.7725887, %v1318_v6  ;;  %v1316_v12 = vmul.f32 0.5, %v1303_v40 }
 0x701   :  { %2064 = vpow2.f32 %v1761_v50  ;;  %v1764_v10 = vmul.f32 -1.442695, %v1322_v32  ;;  %v1320_v56 = vadd.f32 -2.7725887, %v1316_v12  ;;  %v1751_v32 = vld [vmem:[%s2691_s7 + $0x7] ss:$0 sm:$0xff] }
 0x703   :  { %2066 = vpow2.f32 %v1764_v10  ;;  %v1762_v25 = vmul.f32 -1.442695, %v1320_v56  ;;  %v1757_v56 = vld [vmem:[%s2691_s7 + $0x8] ss:$0 sm:$0xff] }
 0x705   :  { %2068 = vpow2.f32 %v1762_v25 }
 0x70c   :  { %v2063_v14 = vpop.eup %2062 }
 0x70d   :  { %v1337_v63 = vadd.f32 1.0, %v2063_v14 }
 0x70e   :  { %v2065_v47 = vpop.eup %2064 }
 0x70f   :  { %2070 = vrcp.f32 %v1337_v63  ;;  %v1335_v61 = vadd.f32 1.0, %v2065_v47 }
 0x710   :  { %v2067_v7 = vpop.eup %2066 }
 0x711   :  { %2072 = vrcp.f32 %v1335_v61  ;;  %v1338_v31 = vadd.f32 1.0, %v2067_v7 }
 0x712   :  { %v2069_v5 = vpop.eup %2068 }
 0x713   :  { %2074 = vrcp.f32 %v1338_v31  ;;  %v1336_v18 = vadd.f32 1.0, %v2069_v5 }
 0x715   :  { %2076 = vrcp.f32 %v1336_v18 }
 0x71c   :  { %v2071_v19 = vpop.eup %2070 }
 0x71d   :  { %v1349_v23 = vsel %vm941_vm2, %v2071_v19, 0.0 }
 0x71e   :  { %v2073_v24 = vpop.eup %2072  ;;  %1354 = vst [vmem:[#allocation3 + $0x30] sm:$0xff] %v1349_v23 }
 0x71f   :  { %v1347_v2 = vsel %vm941_vm2, %v2073_v24, 0.0 }
 0x720   :  { %v2075_v21 = vpop.eup %2074  ;;  %1352 = vst [vmem:[#allocation3 + $0x20] sm:$0xff] %v1347_v2 }
 0x721   :  { %v1350_v27 = vsel %vm941_vm2, %v2075_v21, 0.0  ;;  %v1357_v28 = vpack.c.bf16 %v2075_v21, %v2071_v19  ;;  %v1758_v19 = vld [vmem:[%s2691_s7 + $0x9] ss:$0 sm:$0xff] }
 0x722   :  { %v2077_v29 = vpop.eup %2076  ;;  %1355 = vst [vmem:[#allocation3 + $0x38] sm:$0xff] %v1350_v27  ;;  %v2034_v27 = vld [vmem:[%s2687_s3 + $0x58] sm:$0xff]  }
 0x723   :  { %v1348_v53 = vsel %vm941_vm2, %v2077_v29, 0.0  ;;  %v1356_v30 = vpack.c.bf16 %v2077_v29, %v2073_v24  ;;  %v2035_v29 = vld [vmem:[%s2687_s3 + $0x50] sm:$0xff]  }
 0x724   :  { %1353 = vst [vmem:[#allocation3 + $0x28] sm:$0xff] %v1348_v53  ;;  %v2036_v53 = vld [vmem:[%s2687_s3 + $0x48] sm:$0xff]  }
 0x77d   :  { %v1141_v15 = vpop.xlane.xlu0 %1140 }
 0x77e   :  { %v1142_v11 = vmul.f32 0.015625, %v1141_v15  ;;  %v2037_v15 = vld [vmem:[%s2687_s3 + $0x40] sm:$0xff]  }
 0x780   :  { %v1143_v34 = vsub.f32 %v1133_v49, %v1142_v11  ;;  %v2030_v49 = vld [vmem:[%s2687_s3 + $0x38] sm:$0xff]  }
 0x782   :  { %v1144_v35 = vmul.f32 %v1143_v34, %v1143_v34 }
 0x784   :  { %v1145_v1 = vsel %vm1138_vm5, %v1144_v35, 0.0 }
 0x785   :  { %1146 = vadd.xlane.f32.xlu1 %v1145_v1 }
 0x80e   :  { %v1147_v51 = vpop.xlane.xlu1 %1146 }
 0x80f   :  { %v1148_v39 = vmul.f32 0.015625, %v1147_v51 }
 0x811   :  { %v1149_v54 = vadd.f32 1e-05, %v1148_v39 }
 0x813   :  { %2078 = vrsqrt.f32 %v1149_v54 }
 0x820   :  { %v2079_v41 = vpop.eup %2078 }
 0x821   :  { %v1151_v58 = vmul.f32 %v2079_v41, %v1143_v34 }
 0x823   :  { %v1156_v36 = vmul.f32 %v2597_v13, %v1151_v58 }
 0x825   :  { %v1161_v45 = vadd.f32 %v2602_v4, %v1156_v36 }
 0x827   :  { %v1162_v48 = vpack.c.bf16 %v1161_v45, %v1161_v45 }
 0x829   :  { %1938 = vmatmul.mubr.msk.bf16.vlgmr.msra.gmra.mxu0 %vm171_vm0, %v1162_v48 }
 0x82a   :  { %1948 = vmatpush3.bf16.msra.mxu0 %v2484_v37  ;;  %1949 = vmatprep.mubr.msk.bf16.mxu0 %vm941_vm2, %v1356_v30  ;;  %v2032_v37 = vld [vmem:[%s2687_s3 + $0x28] sm:$0xff]   ;;  %s2110_s3 = smov [#allocation3]  }
 0x82b   :  { %1961 = vmatprep.subr.bf16.mxu0 %v2108_v8  ;;  %s1646_s24 = sshll.u32 %s2110_s3, 4  ;;  %s1647_s24 = int_to_ptr.vmem [resolvable:$true] %s1646_s24 }
 0x82c   :  { %s2082_s25 = scalar_lea.vmem %s1647_s24, 1024  ;;  %p2087_p1 = scmp.lt.s32.totalorder %s1647_s24, %s1647_s24 }
 0x82d   :  { %p2083_p0 = scmp.ne.s32.totalorder %s1647_s24, %s2082_s25  ;;  %p2088_p2 = scmp.lt.s32.totalorder %s2082_s25, %s2082_s25 }
 0x82f   :  { %p2089_p3 = por %p2088_p2, %p2087_p1 }
 0x831   :  { %1950 = vmatmul.mubr.msk.bf16.vlgmr.msra.gmra.mxu0 %vm941_vm2, %v1357_v28  ;;  %p2090_p4 = pnand %p2089_p3, %p2083_p0 }
 0x832   :  { %1969 = vmatprep.mubr.msk.bf16.mxu0 %vm2109_vm3, %v2108_v8  ;;  %1962 = vmatpush3.bf16.msra.mxu0 %v2030_v49 }
 0x833   :  { %1963 = vmatprep.subr.bf16.mxu0 %v2108_v8 }
 0x836   :  { %1964 = vmatpush3.bf16.msra.mxu0 %v2031_v52 }
 0x837   :  { %1965 = vmatprep.subr.bf16.mxu0 %v2108_v8 }
 0x83a   :  { %1966 = vmatpush3.bf16.msra.mxu0 %v2032_v37 }
 0x83b   :  { %1967 = vmatprep.subr.bf16.mxu0 %v2108_v8 }
 0x83e   :  { %1968 = vmatpush3.bf16.msra.mxu0 %v2033_v57 }
 0x8e9   :  { %v1237_v43 = vpop.f32.mrf.mxu0 }
 0x8eb   :  { %v1939_v9 = vpop.f32.mrf.mxu0 }
 0x8ed   :  { %v1240_v16 = vpop.f32.mrf.mxu0 }
 0x8ef   :  { %v1940_v59 = vpop.f32.mrf.mxu0 }
 0x8f1   :  { %v1951_v44 = vpop.f32.mrf.mxu0 }
 0x8f2   :  { %v1415_v17 = vmul.f32 %v1951_v44, %v1801_v26 }
 0x8f3   :  { %v1398_v46 = vpop.f32.mrf.mxu0 }
 0x8f4   :  { %v1413_v40 = vmul.f32 %v1797_v55, %v1398_v46 }
 0x8f5   :  { %v1952_v60 = vpop.f32.mrf.mxu0 }
 0x8f6   :  { %v1416_v22 = vmul.f32 %v1952_v60, %v1802_v33 }
 0x8f7   :  { %v1401_v0 = vpop.f32.mrf.mxu0 }
 0x8f8   :  { %v1418_v3 = vpack.c.bf16 %v1416_v22, %v1415_v17  ;;  %v1414_v6 = vmul.f32 %v1798_v62, %v1401_v0 }
 0x8fa   :  { %1954 = vmatpush3.bf16.msra.mxu1 %v1418_v3  ;;  %v1417_v50 = vpack.c.bf16 %v1414_v6, %v1413_v40 }
 0x8fb   :  { %1955 = vmatprep.subr.bf16.mxu1 %v2108_v8 }
 0x8fe   :  { %1956 = vmatpush3.bf16.msra.mxu1 %v1417_v50 }
 0x8ff   :  { %1973 = vmatprep.subr.bf16.mxu1 %v2108_v8 }
 0x901   :  { %1958 = vmatmul.mubr.msk.bf16.vlgmr.msra.gmra.mxu1 %vm1013_vm4, %v2549_v38  ;;  %v1238_v38 = vadd.f32 %v1751_v32, %v1237_v43 }
 0x902   :  { %1981 = vmatprep.mubr.msk.bf16.mxu1 %vm2109_vm3, %v2108_v8  ;;  %1974 = vmatpush3.bf16.msra.mxu1 %v2034_v27 }
 0x903   :  { %v1243_v12 = vmax.f32 %v1238_v38, 0.0  ;;  %1975 = vmatprep.subr.bf16.mxu1 %v2108_v8 }
 0x905   :  { %v1248_v47 = vmul.f32 %v1757_v56, %v1243_v12 }
 0x906   :  { %1976 = vmatpush3.bf16.msra.mxu1 %v2035_v29 }
 0x907   :  { %v1249_v31 = vsel %vm1138_vm5, %v1248_v47, 0.0  ;;  %1977 = vmatprep.subr.bf16.mxu1 %v2108_v8 }
 0x90a   :  { %1978 = vmatpush3.bf16.msra.mxu1 %v2036_v53 }
 0x90b   :  { %1979 = vmatprep.subr.bf16.mxu1 %v2108_v8 }
 0x90e   :  { %1980 = vmatpush3.bf16.msra.mxu1 %v2037_v15 }
 0x9c1   :  { %v1453_v26 = vpop.f32.mrf.mxu1 }
 0x9c2   :  { %v1459_v33 = vpack.c.bf16 %v1453_v26, %v1453_v26 }
 0x9c3   :  { %v1959_v42 = vpop.f32.mrf.mxu1 }
 0x9c4   :  { %1970 = vmatmul.mubr.msk.bf16.vlgmr.msra.gmra.mxu0 %vm171_vm0, %v1459_v33 }
 0x9c5   :  { %v1456_v62 = vpop.f32.mrf.mxu1 }
 0x9c7   :  { %v1960_v55 = vpop.f32.mrf.mxu1 }
 0xa84   :  { %v1529_v10 = vpop.f32.mrf.mxu0 }
 0xa85   :  { %v1530_v25 = vadd.f32 %v2585_v20, %v1529_v10 }
 0xa86   :  { %v1971_v14 = vpop.f32.mrf.mxu0 }
 0xa87   :  { %v1535_v63 = vsel %vm1138_vm5, %v1530_v25, 0.0 }
 0xa88   :  { %1536 = vadd.xlane.f32.xlu0 %v1535_v63  ;;  %v1532_v61 = vpop.f32.mrf.mxu0 }
 0xa8a   :  { %v1972_v7 = vpop.f32.mrf.mxu0 }
 0xa8c   :  { %1250 = vadd.xlane.f32.xlu0 %v1249_v31 }
 0xb11   :  { %v1537_v5 = vpop.xlane.xlu0 %1536 }
 0xb12   :  { %v1538_v18 = vmul.f32 0.015625, %v1537_v5 }
 0xb14   :  { %v1539_v23 = vsub.f32 %v1530_v25, %v1538_v18 }
 0xb15   :  { %v1251_v24 = vpop.xlane.xlu0 %1250 }
 0xb16   :  { %v1256_v2 = vadd.f32 %v1758_v19, %v1251_v24  ;;  %v1540_v20 = vmul.f32 %v1539_v23, %v1539_v23 }
 0xb18   :  { %1259 = vperm.xlu0 %2006, %v1256_v2   ;;  %v1541_v21 = vsel %vm1138_vm5, %v1540_v20, 0.0 }
 0xb19   :  { %1542 = vadd.xlane.f32.xlu1 %v1541_v21 }
 0xb93   :  { %v1260_v11 = vpop.permute.xlu0 %1259 }
 0xb94   :  { %1262 = vst [vmem:[%s2692_s8] sm:$0x3] %v1260_v11 }
 0xba2   :  { %v1543_v34 = vpop.xlane.xlu1 %1542 }
 0xba3   :  { %v1544_v35 = vmul.f32 0.015625, %v1543_v34 }
 0xba5   :  { %v1545_v1 = vadd.f32 1e-05, %v1544_v35 }
 0xba7   :  { %2080 = vrsqrt.f32 %v1545_v1 }
 0xbb4   :  { %v2081_v51 = vpop.eup %2080 }
 0xbb5   :  { %v1547_v39 = vmul.f32 %v2081_v51, %v1539_v23 }
 0xbb7   :  { %v1548_v54 = vmul.f32 %v2597_v13, %v1547_v39 }
 0xbb9   :  { %v1549_v41 = vadd.f32 %v2602_v4, %v1548_v54 }
 0xbbb   :  { %v1550_v58 = vpack.c.bf16 %v1549_v41, %v1549_v41 }
 0xbbd   :  { %1982 = vmatmul.mubr.msk.bf16.vlgmr.msra.gmra.mxu1 %vm171_vm0, %v1550_v58 }
 0xc7d   :  { %v1620_v8 = vpop.f32.mrf.mxu1 }
 0xc7e   :  { %v1621_v36 = vadd.f32 %v1751_v32, %v1620_v8 }
 0xc7f   :  { %v1983_v45 = vpop.f32.mrf.mxu1 }
 0xc80   :  { %v1626_v30 = vmax.f32 %v1621_v36, 0.0 }
 0xc81   :  { %v1623_v48 = vpop.f32.mrf.mxu1 }
 0xc82   :  { %v1627_v28 = vmul.f32 %v1757_v56, %v1626_v30 }
 0xc83   :  { %v1984_v49 = vpop.f32.mrf.mxu1 }
 0xc84   :  { %v1628_v52 = vsel %vm1138_vm5, %v1627_v28, 0.0 }
 0xc85   :  { %1629 = vadd.xlane.f32.xlu1 %v1628_v52 }
 0xd0e   :  { %v1630_v37 = vpop.xlane.xlu1 %1629 }
 0xd0f   :  { %v1631_v43 = vadd.f32 %v1758_v19, %v1630_v37 }
 0xd10   :  { %2093 = shalt.err (!%p2090_p4)
}
 0xd11   :  { %s2111_s2 = smov 128   ;;  %s2112_s26 = smov 8   ;;  %1634 = vperm.xlu1 %2007, %v1631_v43  }
 0xd12   :  { %1652 = dma.vmem_to_hbm [thread:$0]  %s1647_s24, 1024, %s2693_s9, [#allocation4], %s2111_s2, %s2111_s2, %s2112_s26  }
 0xd8c   :  { %v1635_v13 = vpop.permute.xlu1 %1634 }
 0xd8d   :  { %1794 = vst [vmem:[%s2692_s8 + $0x2] sm:$0x3] %v1635_v13 }
 0xd8e   :  { %2102 = dma.done.wait [#allocation4], 1024  }
 0xd8f   :  { %2103 = vsyncadd [#allocation4], 4294966272 }
 0xd90   :  { %1658 = vsyncpa [#allocation4], 1 }

</bundles_post_ra>
